<compile_context>
chip_gen: v7x
topology: tpu7x:2x2x1
jax: 0.10.0
libtpu: 0.0.40
codegen_flags: <defaults>
</compile_context>

<pallas_src>
import numpy as np
import jax
import jax.numpy as jnp
from jax import lax
from jax.experimental import pallas as pl
from jax.experimental.pallas import tpu as pltpu

EPS = 1e-5  # nn.BatchNorm2d default eps


def _band_weight(w_hwio, width):
    """Fold a 3x3 conv weight (HWIO) AND the horizontal zero-padding into a
    per-kh stack of banded matrices T of shape (3, width*Cin, width*Cout):
    one UNPADDED activation row (lane-dense (w, c) minor layout) @ T[kh],
    accumulated over the three kh taps of an H-padded window, equals one full
    conv output row block (stride 1, pad 1)."""
    KH, KW, Cin, Cout = w_hwio.shape
    sel = np.zeros((KW, width, width), np.float32)
    for kw in range(KW):
        for wo in range(width):
            wi = wo + kw - (KW // 2)      # horizontal input index; pad folded in
            if 0 <= wi < width:
                sel[kw, wi, wo] = 1.0
    # T[kh, w_in, ci, w_out, co] = w[kh, w_in - w_out + 1, ci, co] (banded, else 0)
    t = jnp.einsum('kiw,hkco->hicwo', jnp.asarray(sel), w_hwio)
    return t.reshape(KH, width * Cin, width * Cout)


def basic_block_kernel(x_ref, t1_ref, g1_ref, b1_ref, t2_ref, g2_ref, b2_ref,
                       o_ref, pad_ref):
    # x_ref  : (N, H, W*C)        input, lane-dense (w, c) minor layout
    # t*_ref : (3, W*C, W*C)      banded conv weights, one (128,128) block per kh tap (bf16)
    # g*/b*  : (1, C)             BN affine params
    # o_ref  : (N, H, W*C)
    # pad_ref: (N, H+2, W*C)      VMEM scratch: zero top/bottom halo rows + interior (f32)
    N, H, WC = x_ref.shape
    C = g1_ref.shape[1]
    W = WC // C
    NH = N * H
    cnt = jnp.float32(N * H * W)

    # ---- zero ONLY the top/bottom halo rows (horizontal padding lives in T) ----
    pad_ref[:, 0:1, :] = jnp.zeros((N, 1, WC), jnp.float32)
    pad_ref[:, H + 1:H + 2, :] = jnp.zeros((N, 1, WC), jnp.float32)

    # load x once; reused for the pad-interior write and the residual add
    x_f32 = x_ref[...].astype(jnp.float32)
    pad_ref[:, 1:H + 1, :] = x_f32

    def conv(t_ref):
        xp = pad_ref[...]

        def tap(kh):
            # lane-aligned (NH, 128) bf16 window @ (128, 128) bf16 block, f32 acc
            lhs = xp[:, kh:kh + H, :].reshape(NH, WC).astype(jnp.bfloat16)
            return jnp.dot(lhs, t_ref[kh], preferred_element_type=jnp.float32)

        # 3 accumulating MXU matmuls (one per kh tap); no zeros-init accumulator
        return tap(0) + tap(1) + tap(2)

    def bn_scale_shift(acc, g_ref, b_ref):
        # one-pass training-mode batch stats (f32 accumulation); stack sum and
        # sum-of-squares so the strided per-channel lane reduction runs once
        rows = jnp.concatenate(
            [jnp.sum(acc, axis=0, keepdims=True),
             jnp.sum(acc * acc, axis=0, keepdims=True)], axis=0)        # (2, W*C)
        stats = rows.reshape(2, W, C).sum(axis=1)                       # (2, C)
        mean = stats[0:1] / cnt
        var = stats[1:2] / cnt - mean * mean
        inv = lax.rsqrt(var + EPS)
        scale = g_ref[...] * inv                   # (1, C)
        shift = b_ref[...] - mean * scale          # (1, C)
        # tile per-channel params across the lane-dense (w, c) axis
        scale_t = jnp.broadcast_to(scale.reshape(1, 1, C), (1, W, C)).reshape(1, WC)
        shift_t = jnp.broadcast_to(shift.reshape(1, 1, C), (1, W, C)).reshape(1, WC)
        return scale_t, shift_t

    # ---- conv1 -> bn1 (batch stats) -> relu ----
    acc1 = conv(t1_ref)                                       # (NH, W*C) f32
    sc1, sh1 = bn_scale_shift(acc1, g1_ref, b1_ref)
    out1 = jnp.maximum(acc1 * sc1 + sh1, 0.0)

    # relu(bn1) is conv2's input: overwrite the (already zero-haloed) pad interior
    pad_ref[:, 1:H + 1, :] = out1.reshape(N, H, WC)

    # ---- conv2 -> bn2 ----
    acc2 = conv(t2_ref)
    sc2, sh2 = bn_scale_shift(acc2, g2_ref, b2_ref)
    out2 = acc2 * sc2 + sh2

    # ---- identity shortcut + final relu; lane-dense (W*C = 128) unmasked store ----
    out = jnp.maximum(out2 + x_f32.reshape(NH, WC), 0.0)
    o_ref[...] = out.reshape(N, H, WC).astype(o_ref.dtype)


def basic_block(x_nchw, w1_oihw, gamma1, beta1, w2_oihw, gamma2, beta2):
    """BasicBlock forward. x_nchw: (N, C, H, W) float32; stride=1, identity shortcut."""
    N, C, H, W = x_nchw.shape
    Cout = w1_oihw.shape[0]
    assert C == Cout, "identity-shortcut path only (stride=1, in_planes == planes)"

    # NCHW -> NHWC -> lane-dense (N, H, W*C); W*C = 128 lanes for the test shape.
    x = jnp.transpose(x_nchw, (0, 2, 3, 1)).reshape(N, H, W * C)

    # PyTorch OIHW -> HWIO -> per-kh banded matrices (horizontal padding absorbed),
    # cast to bf16 for the MXU (f32 accumulation in-kernel).
    t1 = _band_weight(jnp.transpose(w1_oihw, (2, 3, 1, 0)).astype(jnp.float32),
                      W).astype(jnp.bfloat16)
    t2 = _band_weight(jnp.transpose(w2_oihw, (2, 3, 1, 0)).astype(jnp.float32),
                      W).astype(jnp.bfloat16)
    g1 = gamma1.reshape(1, Cout).astype(jnp.float32)
    b1 = beta1.reshape(1, Cout).astype(jnp.float32)
    g2 = gamma2.reshape(1, Cout).astype(jnp.float32)
    b2 = beta2.reshape(1, Cout).astype(jnp.float32)

    vmem = pl.BlockSpec(memory_space=pltpu.MemorySpace.VMEM)
    out = pl.pallas_call(
        basic_block_kernel,
        out_shape=jax.ShapeDtypeStruct((N, H, W * C), jnp.float32),
        in_specs=[vmem] * 7,
        out_specs=vmem,
        scratch_shapes=[pltpu.VMEM((N, H + 2, W * C), jnp.float32)],
        compiler_params=pltpu.CompilerParams(vmem_limit_bytes=32 * 1024 * 1024),
    )(x, t1, g1, b1, t2, g2, b2)

    # lane-dense (N, H, W*C) -> NCHW
    return jnp.transpose(out.reshape(N, H, W, C), (0, 3, 1, 2))


def reference(x, w1, g1, b1, w2, g2, b2):
    """Plain-JAX reference mirroring the PyTorch forward (training-mode BN)."""
    def conv(h, w):
        return lax.conv_general_dilated(h, w, (1, 1), ((1, 1), (1, 1)),
                                        dimension_numbers=("NCHW", "OIHW", "NCHW"))

    def bn(h, g, b):
        mean = jnp.mean(h, axis=(0, 2, 3), keepdims=True)
        var = jnp.mean((h - mean) ** 2, axis=(0, 2, 3), keepdims=True)
        return ((h - mean) * lax.rsqrt(var + EPS)
                * g.reshape(1, -1, 1, 1) + b.reshape(1, -1, 1, 1))

    out = jax.nn.relu(bn(conv(x, w1), g1, b1))
    out = bn(conv(out, w2), g2, b2)
    out = out + x
    return jax.nn.relu(out)


if __name__ == "__main__":
    key = jax.random.PRNGKey(0)
    k1, k2, k3, k4, k5, k6, k7 = jax.random.split(key, 7)

    # Small shapes consistent with the module: batch=2, in_planes=planes=8, 16x16 spatial
    # (W * C = 128 -> exactly one lane-dense vreg row).
    N, C, H, W = 2, 8, 16, 16
    planes = C

    x = jax.random.normal(k1, (N, C, H, W), jnp.float32)
    w1 = jax.random.normal(k2, (planes, C, 3, 3), jnp.float32) * 0.1      # conv1 OIHW
    w2 = jax.random.normal(k3, (planes, planes, 3, 3), jnp.float32) * 0.1  # conv2 OIHW
    g1 = 1.0 + 0.1 * jax.random.normal(k4, (planes,), jnp.float32)
    b1 = 0.1 * jax.random.normal(k5, (planes,), jnp.float32)
    g2 = 1.0 + 0.1 * jax.random.normal(k6, (planes,), jnp.float32)
    b2 = 0.1 * jax.random.normal(k7, (planes,), jnp.float32)

    out = basic_block(x, w1, g1, b1, w2, g2, b2)
    out = jax.block_until_ready(out)

    ref = jax.block_until_ready(reference(x, w1, g1, b1, w2, g2, b2))
    assert out.shape == (N, planes, H, W)
    # bf16 MXU operands carry ~2^-9 relative rounding through two chained convs,
    # amplified by BN normalization -> compare at bf16-operand tolerance against
    # the f32 reference (BN stats / elementwise math stay f32 in the kernel).
    np.testing.assert_allclose(np.asarray(out), np.asarray(ref), atol=2e-2, rtol=2e-2)

    print("KERNEL_OK")
</pallas_src>

<mosaic_0001>
module attributes {stable_mosaic.version = 11 : i64} {
  func.func @basic_block_kernel(%arg0: memref<2x16x128xf32, #tpu.memory_space<vmem>>, %arg1: memref<3x128x128xbf16, #tpu.memory_space<vmem>>, %arg2: memref<1x8xf32, #tpu.memory_space<vmem>>, %arg3: memref<1x8xf32, #tpu.memory_space<vmem>>, %arg4: memref<3x128x128xbf16, #tpu.memory_space<vmem>>, %arg5: memref<1x8xf32, #tpu.memory_space<vmem>>, %arg6: memref<1x8xf32, #tpu.memory_space<vmem>>, %arg7: memref<2x16x128xf32, #tpu.memory_space<vmem>>, %arg8: memref<2x18x128xf32, #tpu.memory_space<vmem>>) attributes {dimension_semantics = [], scalar_prefetch = 0 : i64, scratch_operands = 1 : i64, tpu.core_type = #tpu.core_type<tc>} {
    %cst = arith.constant 0.000000e+00 : f32
    %0 = vector.broadcast %cst : f32 to vector<2x1x128xf32>
    %c0 = arith.constant 0 : index
    %c0_0 = arith.constant 0 : index
    %c0_1 = arith.constant 0 : index
    %1 = vector.load %arg8[%c0, %c0_0, %c0_1] : memref<2x18x128xf32, #tpu.memory_space<vmem>>, vector<2x1x128xf32>
    tpu.vector_store %arg8[%c0, %c0_0, %c0_1], %0 {strides = array<i32>} : memref<2x18x128xf32, #tpu.memory_space<vmem>>, vector<2x1x128xf32>,
    %cst_2 = arith.constant 0.000000e+00 : f32
    %2 = vector.broadcast %cst_2 : f32 to vector<2x1x128xf32>
    %c0_3 = arith.constant 0 : index
    %c17 = arith.constant 17 : index
    %c0_4 = arith.constant 0 : index
    %3 = vector.load %arg8[%c0_3, %c17, %c0_4] : memref<2x18x128xf32, #tpu.memory_space<vmem>>, vector<2x1x128xf32>
    tpu.vector_store %arg8[%c0_3, %c17, %c0_4], %2 {strides = array<i32>} : memref<2x18x128xf32, #tpu.memory_space<vmem>>, vector<2x1x128xf32>,
    %c0_5 = arith.constant 0 : index
    %c0_6 = arith.constant 0 : index
    %c0_7 = arith.constant 0 : index
    %4 = vector.load %arg0[%c0_5, %c0_6, %c0_7] : memref<2x16x128xf32, #tpu.memory_space<vmem>>, vector<2x16x128xf32>
    %c0_8 = arith.constant 0 : index
    %c1 = arith.constant 1 : index
    %c0_9 = arith.constant 0 : index
    %5 = vector.load %arg8[%c0_8, %c1, %c0_9] : memref<2x18x128xf32, #tpu.memory_space<vmem>>, vector<2x16x128xf32>
    tpu.vector_store %arg8[%c0_8, %c1, %c0_9], %4 {strides = array<i32>} : memref<2x18x128xf32, #tpu.memory_space<vmem>>, vector<2x16x128xf32>,
    %c0_10 = arith.constant 0 : index
    %c0_11 = arith.constant 0 : index
    %c0_12 = arith.constant 0 : index
    %6 = vector.load %arg8[%c0_10, %c0_11, %c0_12] : memref<2x18x128xf32, #tpu.memory_space<vmem>>, vector<2x18x128xf32>
    %7 = vector.extract_strided_slice %6 {offsets = [0, 0, 0], sizes = [2, 16, 128], strides = [1, 1, 1]} : vector<2x18x128xf32> to vector<2x16x128xf32>
    %8 = vector.shape_cast %7 : vector<2x16x128xf32> to vector<32x128xf32>
    %9 = arith.truncf %8 : vector<32x128xf32> to vector<32x128xbf16>
    %c0_13 = arith.constant 0 : index
    %c0_14 = arith.constant 0 : index
    %c0_15 = arith.constant 0 : index
    %10 = vector.load %arg1[%c0_13, %c0_14, %c0_15] : memref<3x128x128xbf16, #tpu.memory_space<vmem>>, vector<1x128x128xbf16>
    %11 = vector.shape_cast %10 : vector<1x128x128xbf16> to vector<128x128xbf16>
    %cst_16 = arith.constant dense<0.000000e+00> : vector<32x128xf32>
    %12 = tpu.matmul %9, %11, %cst_16 {dimension_numbers = #tpu.dot_dimension_numbers<[1], [0], [0], [1], [0, 0, 1, 1], [], []>} : vector<32x128xbf16>, vector<128x128xbf16>, vector<32x128xf32> -> vector<32x128xf32>
    %13 = vector.extract_strided_slice %6 {offsets = [0, 1, 0], sizes = [2, 16, 128], strides = [1, 1, 1]} : vector<2x18x128xf32> to vector<2x16x128xf32>
    %14 = vector.shape_cast %13 : vector<2x16x128xf32> to vector<32x128xf32>
    %15 = arith.truncf %14 : vector<32x128xf32> to vector<32x128xbf16>
    %c1_17 = arith.constant 1 : index
    %c0_18 = arith.constant 0 : index
    %c0_19 = arith.constant 0 : index
    %16 = vector.load %arg1[%c1_17, %c0_18, %c0_19] : memref<3x128x128xbf16, #tpu.memory_space<vmem>>, vector<1x128x128xbf16>
    %17 = vector.shape_cast %16 : vector<1x128x128xbf16> to vector<128x128xbf16>
    %cst_20 = arith.constant dense<0.000000e+00> : vector<32x128xf32>
    %18 = tpu.matmul %15, %17, %cst_20 {dimension_numbers = #tpu.dot_dimension_numbers<[1], [0], [0], [1], [0, 0, 1, 1], [], []>} : vector<32x128xbf16>, vector<128x128xbf16>, vector<32x128xf32> -> vector<32x128xf32>
    %19 = arith.addf %12, %18 : vector<32x128xf32>
    %20 = vector.extract_strided_slice %6 {offsets = [0, 2, 0], sizes = [2, 16, 128], strides = [1, 1, 1]} : vector<2x18x128xf32> to vector<2x16x128xf32>
    %21 = vector.shape_cast %20 : vector<2x16x128xf32> to vector<32x128xf32>
    %22 = arith.truncf %21 : vector<32x128xf32> to vector<32x128xbf16>
    %c2 = arith.constant 2 : index
    %c0_21 = arith.constant 0 : index
    %c0_22 = arith.constant 0 : index
    %23 = vector.load %arg1[%c2, %c0_21, %c0_22] : memref<3x128x128xbf16, #tpu.memory_space<vmem>>, vector<1x128x128xbf16>
    %24 = vector.shape_cast %23 : vector<1x128x128xbf16> to vector<128x128xbf16>
    %cst_23 = arith.constant dense<0.000000e+00> : vector<32x128xf32>
    %25 = tpu.matmul %22, %24, %cst_23 {dimension_numbers = #tpu.dot_dimension_numbers<[1], [0], [0], [1], [0, 0, 1, 1], [], []>} : vector<32x128xbf16>, vector<128x128xbf16>, vector<32x128xf32> -> vector<32x128xf32>
    %26 = arith.addf %19, %25 : vector<32x128xf32>
    %cst_24 = arith.constant dense<0.000000e+00> : vector<128xf32>
    %27 = vector.multi_reduction <add>, %26, %cst_24 [0] : vector<32x128xf32> to vector<128xf32>
    %28 = vector.shape_cast %27 : vector<128xf32> to vector<1x128xf32>
    %29 = arith.mulf %26, %26 : vector<32x128xf32>
    %cst_25 = arith.constant dense<0.000000e+00> : vector<128xf32>
    %30 = vector.multi_reduction <add>, %29, %cst_25 [0] : vector<32x128xf32> to vector<128xf32>
    %31 = vector.shape_cast %30 : vector<128xf32> to vector<1x128xf32>
    %32 = tpu.concatenate %28, %31 in 0 : vector<1x128xf32>, vector<1x128xf32> -> vector<2x128xf32>
    %33 = vector.shape_cast %32 : vector<2x128xf32> to vector<2x16x8xf32>
    %cst_26 = arith.constant dense<0.000000e+00> : vector<2x8xf32>
    %34 = vector.multi_reduction <add>, %33, %cst_26 [1] : vector<2x16x8xf32> to vector<2x8xf32>
    %35 = vector.extract_strided_slice %34 {offsets = [0, 0], sizes = [1, 8], strides = [1, 1]} : vector<2x8xf32> to vector<1x8xf32>
    %cst_27 = arith.constant 5.120000e+02 : f32
    %36 = vector.broadcast %cst_27 : f32 to vector<1x8xf32>
    %37 = arith.divf %35, %36 : vector<1x8xf32>
    %38 = vector.extract_strided_slice %34 {offsets = [1, 0], sizes = [1, 8], strides = [1, 1]} : vector<2x8xf32> to vector<1x8xf32>
    %cst_28 = arith.constant 5.120000e+02 : f32
    %39 = vector.broadcast %cst_28 : f32 to vector<1x8xf32>
    %40 = arith.divf %38, %39 : vector<1x8xf32>
    %41 = arith.mulf %37, %37 : vector<1x8xf32>
    %42 = arith.subf %40, %41 : vector<1x8xf32>
    %cst_29 = arith.constant 9.99999974E-6 : f32
    %43 = vector.broadcast %cst_29 : f32 to vector<1x8xf32>
    %44 = arith.addf %42, %43 : vector<1x8xf32>
    %45 = math.rsqrt %44 : vector<1x8xf32>
    %c0_30 = arith.constant 0 : index
    %c0_31 = arith.constant 0 : index
    %46 = vector.load %arg2[%c0_30, %c0_31] : memref<1x8xf32, #tpu.memory_space<vmem>>, vector<1x8xf32>
    %47 = arith.mulf %46, %45 : vector<1x8xf32>
    %c0_32 = arith.constant 0 : index
    %c0_33 = arith.constant 0 : index
    %48 = vector.load %arg3[%c0_32, %c0_33] : memref<1x8xf32, #tpu.memory_space<vmem>>, vector<1x8xf32>
    %49 = arith.mulf %37, %47 : vector<1x8xf32>
    %50 = arith.subf %48, %49 : vector<1x8xf32>
    %51 = vector.shape_cast %47 : vector<1x8xf32> to vector<1x1x8xf32>
    %52 = vector.shape_cast %51 : vector<1x1x8xf32> to vector<1x1x8xf32>
    %53 = vector.broadcast %52 : vector<1x1x8xf32> to vector<1x16x8xf32>
    %54 = vector.shape_cast %53 : vector<1x16x8xf32> to vector<1x128xf32>
    %55 = vector.shape_cast %50 : vector<1x8xf32> to vector<1x1x8xf32>
    %56 = vector.shape_cast %55 : vector<1x1x8xf32> to vector<1x1x8xf32>
    %57 = vector.broadcast %56 : vector<1x1x8xf32> to vector<1x16x8xf32>
    %58 = vector.shape_cast %57 : vector<1x16x8xf32> to vector<1x128xf32>
    %59 = vector.broadcast %54 : vector<1x128xf32> to vector<32x128xf32>
    %60 = arith.mulf %26, %59 : vector<32x128xf32>
    %61 = vector.broadcast %58 : vector<1x128xf32> to vector<32x128xf32>
    %62 = arith.addf %60, %61 : vector<32x128xf32>
    %cst_34 = arith.constant 0.000000e+00 : f32
    %63 = vector.broadcast %cst_34 : f32 to vector<32x128xf32>
    %64 = arith.maximumf %62, %63 : vector<32x128xf32>
    %65 = vector.shape_cast %64 : vector<32x128xf32> to vector<2x16x128xf32>
    %c0_35 = arith.constant 0 : index
    %c1_36 = arith.constant 1 : index
    %c0_37 = arith.constant 0 : index
    %66 = vector.load %arg8[%c0_35, %c1_36, %c0_37] : memref<2x18x128xf32, #tpu.memory_space<vmem>>, vector<2x16x128xf32>
    tpu.vector_store %arg8[%c0_35, %c1_36, %c0_37], %65 {strides = array<i32>} : memref<2x18x128xf32, #tpu.memory_space<vmem>>, vector<2x16x128xf32>,
    %c0_38 = arith.constant 0 : index
    %c0_39 = arith.constant 0 : index
    %c0_40 = arith.constant 0 : index
    %67 = vector.load %arg8[%c0_38, %c0_39, %c0_40] : memref<2x18x128xf32, #tpu.memory_space<vmem>>, vector<2x18x128xf32>
    %68 = vector.extract_strided_slice %67 {offsets = [0, 0, 0], sizes = [2, 16, 128], strides = [1, 1, 1]} : vector<2x18x128xf32> to vector<2x16x128xf32>
    %69 = vector.shape_cast %68 : vector<2x16x128xf32> to vector<32x128xf32>
    %70 = arith.truncf %69 : vector<32x128xf32> to vector<32x128xbf16>
    %c0_41 = arith.constant 0 : index
    %c0_42 = arith.constant 0 : index
    %c0_43 = arith.constant 0 : index
    %71 = vector.load %arg4[%c0_41, %c0_42, %c0_43] : memref<3x128x128xbf16, #tpu.memory_space<vmem>>, vector<1x128x128xbf16>
    %72 = vector.shape_cast %71 : vector<1x128x128xbf16> to vector<128x128xbf16>
    %cst_44 = arith.constant dense<0.000000e+00> : vector<32x128xf32>
    %73 = tpu.matmul %70, %72, %cst_44 {dimension_numbers = #tpu.dot_dimension_numbers<[1], [0], [0], [1], [0, 0, 1, 1], [], []>} : vector<32x128xbf16>, vector<128x128xbf16>, vector<32x128xf32> -> vector<32x128xf32>
    %74 = vector.extract_strided_slice %67 {offsets = [0, 1, 0], sizes = [2, 16, 128], strides = [1, 1, 1]} : vector<2x18x128xf32> to vector<2x16x128xf32>
    %75 = vector.shape_cast %74 : vector<2x16x128xf32> to vector<32x128xf32>
    %76 = arith.truncf %75 : vector<32x128xf32> to vector<32x128xbf16>
    %c1_45 = arith.constant 1 : index
    %c0_46 = arith.constant 0 : index
    %c0_47 = arith.constant 0 : index
    %77 = vector.load %arg4[%c1_45, %c0_46, %c0_47] : memref<3x128x128xbf16, #tpu.memory_space<vmem>>, vector<1x128x128xbf16>
    %78 = vector.shape_cast %77 : vector<1x128x128xbf16> to vector<128x128xbf16>
    %cst_48 = arith.constant dense<0.000000e+00> : vector<32x128xf32>
    %79 = tpu.matmul %76, %78, %cst_48 {dimension_numbers = #tpu.dot_dimension_numbers<[1], [0], [0], [1], [0, 0, 1, 1], [], []>} : vector<32x128xbf16>, vector<128x128xbf16>, vector<32x128xf32> -> vector<32x128xf32>
    %80 = arith.addf %73, %79 : vector<32x128xf32>
    %81 = vector.extract_strided_slice %67 {offsets = [0, 2, 0], sizes = [2, 16, 128], strides = [1, 1, 1]} : vector<2x18x128xf32> to vector<2x16x128xf32>
    %82 = vector.shape_cast %81 : vector<2x16x128xf32> to vector<32x128xf32>
    %83 = arith.truncf %82 : vector<32x128xf32> to vector<32x128xbf16>
    %c2_49 = arith.constant 2 : index
    %c0_50 = arith.constant 0 : index
    %c0_51 = arith.constant 0 : index
    %84 = vector.load %arg4[%c2_49, %c0_50, %c0_51] : memref<3x128x128xbf16, #tpu.memory_space<vmem>>, vector<1x128x128xbf16>
    %85 = vector.shape_cast %84 : vector<1x128x128xbf16> to vector<128x128xbf16>
    %cst_52 = arith.constant dense<0.000000e+00> : vector<32x128xf32>
    %86 = tpu.matmul %83, %85, %cst_52 {dimension_numbers = #tpu.dot_dimension_numbers<[1], [0], [0], [1], [0, 0, 1, 1], [], []>} : vector<32x128xbf16>, vector<128x128xbf16>, vector<32x128xf32> -> vector<32x128xf32>
    %87 = arith.addf %80, %86 : vector<32x128xf32>
    %cst_53 = arith.constant dense<0.000000e+00> : vector<128xf32>
    %88 = vector.multi_reduction <add>, %87, %cst_53 [0] : vector<32x128xf32> to vector<128xf32>
    %89 = vector.shape_cast %88 : vector<128xf32> to vector<1x128xf32>
    %90 = arith.mulf %87, %87 : vector<32x128xf32>
    %cst_54 = arith.constant dense<0.000000e+00> : vector<128xf32>
    %91 = vector.multi_reduction <add>, %90, %cst_54 [0] : vector<32x128xf32> to vector<128xf32>
    %92 = vector.shape_cast %91 : vector<128xf32> to vector<1x128xf32>
    %93 = tpu.concatenate %89, %92 in 0 : vector<1x128xf32>, vector<1x128xf32> -> vector<2x128xf32>
    %94 = vector.shape_cast %93 : vector<2x128xf32> to vector<2x16x8xf32>
    %cst_55 = arith.constant dense<0.000000e+00> : vector<2x8xf32>
    %95 = vector.multi_reduction <add>, %94, %cst_55 [1] : vector<2x16x8xf32> to vector<2x8xf32>
    %96 = vector.extract_strided_slice %95 {offsets = [0, 0], sizes = [1, 8], strides = [1, 1]} : vector<2x8xf32> to vector<1x8xf32>
    %cst_56 = arith.constant 5.120000e+02 : f32
    %97 = vector.broadcast %cst_56 : f32 to vector<1x8xf32>
    %98 = arith.divf %96, %97 : vector<1x8xf32>
    %99 = vector.extract_strided_slice %95 {offsets = [1, 0], sizes = [1, 8], strides = [1, 1]} : vector<2x8xf32> to vector<1x8xf32>
    %cst_57 = arith.constant 5.120000e+02 : f32
    %100 = vector.broadcast %cst_57 : f32 to vector<1x8xf32>
    %101 = arith.divf %99, %100 : vector<1x8xf32>
    %102 = arith.mulf %98, %98 : vector<1x8xf32>
    %103 = arith.subf %101, %102 : vector<1x8xf32>
    %cst_58 = arith.constant 9.99999974E-6 : f32
    %104 = vector.broadcast %cst_58 : f32 to vector<1x8xf32>
    %105 = arith.addf %103, %104 : vector<1x8xf32>
    %106 = math.rsqrt %105 : vector<1x8xf32>
    %c0_59 = arith.constant 0 : index
    %c0_60 = arith.constant 0 : index
    %107 = vector.load %arg5[%c0_59, %c0_60] : memref<1x8xf32, #tpu.memory_space<vmem>>, vector<1x8xf32>
    %108 = arith.mulf %107, %106 : vector<1x8xf32>
    %c0_61 = arith.constant 0 : index
    %c0_62 = arith.constant 0 : index
    %109 = vector.load %arg6[%c0_61, %c0_62] : memref<1x8xf32, #tpu.memory_space<vmem>>, vector<1x8xf32>
    %110 = arith.mulf %98, %108 : vector<1x8xf32>
    %111 = arith.subf %109, %110 : vector<1x8xf32>
    %112 = vector.shape_cast %108 : vector<1x8xf32> to vector<1x1x8xf32>
    %113 = vector.shape_cast %112 : vector<1x1x8xf32> to vector<1x1x8xf32>
    %114 = vector.broadcast %113 : vector<1x1x8xf32> to vector<1x16x8xf32>
    %115 = vector.shape_cast %114 : vector<1x16x8xf32> to vector<1x128xf32>
    %116 = vector.shape_cast %111 : vector<1x8xf32> to vector<1x1x8xf32>
    %117 = vector.shape_cast %116 : vector<1x1x8xf32> to vector<1x1x8xf32>
    %118 = vector.broadcast %117 : vector<1x1x8xf32> to vector<1x16x8xf32>
    %119 = vector.shape_cast %118 : vector<1x16x8xf32> to vector<1x128xf32>
    %120 = vector.broadcast %115 : vector<1x128xf32> to vector<32x128xf32>
    %121 = arith.mulf %87, %120 : vector<32x128xf32>
    %122 = vector.broadcast %119 : vector<1x128xf32> to vector<32x128xf32>
    %123 = arith.addf %121, %122 : vector<32x128xf32>
    %124 = vector.shape_cast %4 : vector<2x16x128xf32> to vector<32x128xf32>
    %125 = arith.addf %123, %124 : vector<32x128xf32>
    %cst_63 = arith.constant 0.000000e+00 : f32
    %126 = vector.broadcast %cst_63 : f32 to vector<32x128xf32>
    %127 = arith.maximumf %125, %126 : vector<32x128xf32>
    %128 = vector.shape_cast %127 : vector<32x128xf32> to vector<2x16x128xf32>
    %c0_64 = arith.constant 0 : index
    %c0_65 = arith.constant 0 : index
    %c0_66 = arith.constant 0 : index
    %129 = vector.load %arg7[%c0_64, %c0_65, %c0_66] : memref<2x16x128xf32, #tpu.memory_space<vmem>>, vector<2x16x128xf32>
    tpu.vector_store %arg7[%c0_64, %c0_65, %c0_66], %128 {strides = array<i32>} : memref<2x16x128xf32, #tpu.memory_space<vmem>>, vector<2x16x128xf32>,
    return
  }
}

</mosaic_0001>

<bundles_post_ra>
// kernel: tpu_custom_call.1
= control target key start
LH: loop header
LB: loop body
LE: loop exit
PB: predicated region body
PF: predicated region fallthrough
CT: control target
= control target key end

     0   :  { %12 = vsyncpa [#allocation4], 0  ;;  %s2767_s0 = inlined_call_operand.hbm [shape: f32[2,16,128], index: 0, kind: input, shape index: {}]   ;;  %s2768_s1 = inlined_call_operand.hbm [shape: bf16[3,128,128], index: 1, kind: input, shape index: {}]   ;;  %s2769_s2 = inlined_call_operand.vmem [shape: f32[1,8], index: 2, kind: input, shape index: {}]   ;;  %s2770_s3 = inlined_call_operand.vmem [shape: f32[1,8], index: 3, kind: input, shape index: {}]   ;;  %s2771_s4 = inlined_call_operand.hbm [shape: bf16[3,128,128], index: 4, kind: input, shape index: {}]   ;;  %s2772_s5 = inlined_call_operand.vmem [shape: f32[1,8], index: 5, kind: input, shape index: {}]   ;;  %s2773_s6 = inlined_call_operand.vmem [shape: f32[1,8], index: 6, kind: input, shape index: {}]   ;;  %s2774_s7 = inlined_call_operand.hbm [shape: f32[2,16,128], index: 7, kind: output, shape index: {}]  }
   0x1   :  { %13 = vsyncpa [#allocation7], 0 }
   0x2   :  { %14 = vsyncpa [#allocation5], 0  ;;  %s2254_s24 = smov [#allocation6]   ;;  %s2160_s28 = scalar_lea.hbm %s2768_s1, 3072 }
   0x3   :  { %s32_s25 = sshll.u32 %s2254_s24, 4  ;;  %p2161_p0 = scmp.ne.s32.totalorder %s2768_s1, %s2160_s28  ;;  %s33_s25 = int_to_ptr.vmem [resolvable:$true] %s32_s25 }
   0x4   :  { %p2164_p1 = scmp.lt.u32.totalorder %s2160_s28, %s2768_s1 }
   0x6   :  { %p2166_p2 = pnand %p2164_p1, %p2161_p0 }
   0x8   :  { %2169 = shalt.err (!%p2166_p2)
}
   0x9   :  { %s2170_s10 = scalar_lea.vmem %s33_s25, 3072  ;;  %p2175_p4 = scmp.lt.s32.totalorder %s33_s25, %s33_s25 }
   0xa   :  { %p2171_p3 = scmp.ne.s32.totalorder %s33_s25, %s2170_s10  ;;  %p2176_p5 = scmp.lt.s32.totalorder %s2170_s10, %s2170_s10 }
   0xc   :  { %p2177_p6 = por %p2176_p5, %p2175_p4 }
   0xe   :  { %p2178_p7 = pnand %p2177_p6, %p2171_p3 }
  0x10   :  { %2181 = shalt.err (!%p2178_p7)
}
  0x11   :  { %s2255_s11 = smov 64   ;;  %s2256_s12 = smov 4  }
  0x12   :  { %38 = dma.hbm_to_vmem [thread:$0]  %s2768_s1, 3072, %s33_s25, [#allocation7], %s2255_s11, %s2255_s11, %s2256_s12  }
  0x13   :  { %s2257_s15 = smov [#allocation3]   ;;  %s2182_s19 = scalar_lea.hbm %s2767_s0, 512 }
  0x14   :  { %s20_s16 = sshll.u32 %s2257_s15, 4  ;;  %p2183_p8 = scmp.ne.s32.totalorder %s2767_s0, %s2182_s19  ;;  %s21_s16 = int_to_ptr.vmem [resolvable:$true] %s20_s16 }
  0x15   :  { %p2186_p9 = scmp.lt.u32.totalorder %s2182_s19, %s2767_s0 }
  0x17   :  { %p2188_p10 = pnand %p2186_p9, %p2183_p8 }
  0x19   :  { %2191 = shalt.err (!%p2188_p10)
}
  0x1a   :  { %s2192_s24 = scalar_lea.vmem %s21_s16, 512  ;;  %p2197_p12 = scmp.lt.s32.totalorder %s21_s16, %s21_s16 }
  0x1b   :  { %p2193_p11 = scmp.ne.s32.totalorder %s21_s16, %s2192_s24  ;;  %p2198_p13 = scmp.lt.s32.totalorder %s2192_s24, %s2192_s24 }
  0x1d   :  { %p2199_p0 = por %p2198_p13, %p2197_p12 }
  0x1f   :  { %p2200_p1 = pnand %p2199_p0, %p2193_p11 }
  0x21   :  { %2203 = shalt.err (!%p2200_p1)
}
  0x22   :  { %s2258_s1 = smov 128   ;;  %s2259_s25 = smov 8  }
  0x23   :  { %26 = dma.hbm_to_vmem [thread:$0]  %s2767_s0, 512, %s21_s16, [#allocation4], %s2258_s1, %s2258_s1, %s2259_s25  }
  0x24   :  { %s2260_s28 = smov [#allocation8]   ;;  %s2204_s9 = scalar_lea.hbm %s2771_s4, 3072 }
  0x25   :  { %s48_s29 = sshll.u32 %s2260_s28, 4  ;;  %p2205_p2 = scmp.ne.s32.totalorder %s2771_s4, %s2204_s9  ;;  %s49_s29 = int_to_ptr.vmem [resolvable:$true] %s48_s29 }
  0x26   :  { %p2208_p3 = scmp.lt.u32.totalorder %s2204_s9, %s2771_s4 }
  0x28   :  { %p2210_p4 = pnand %p2208_p3, %p2205_p2 }
  0x2a   :  { %2213 = shalt.err (!%p2210_p4)
}
  0x2b   :  { %s2214_s17 = scalar_lea.vmem %s49_s29, 3072  ;;  %p2219_p6 = scmp.lt.s32.totalorder %s49_s29, %s49_s29 }
  0x2c   :  { %p2215_p5 = scmp.ne.s32.totalorder %s49_s29, %s2214_s17  ;;  %p2220_p7 = scmp.lt.s32.totalorder %s2214_s17, %s2214_s17 }
  0x2e   :  { %p2221_p8 = por %p2220_p7, %p2219_p6 }
  0x30   :  { %p2222_p9 = pnand %p2221_p8, %p2215_p5 }
  0x32   :  { %2225 = shalt.err (!%p2222_p9)
}
  0x33   :  { %54 = dma.hbm_to_vmem [thread:$0]  %s2771_s4, 3072, %s49_s29, [#allocation7], %s2255_s11, %s2255_s11, %s2256_s12  }
  0x34   :  { %2248 = dma.done.wait [#allocation4], 512  }
  0x35   :  { %2249 = vsyncadd [#allocation4], 4294966784 }
  0x36   :  { %2250 = dma.done.wait [#allocation7], 6144  }
  0x37   :  { %2251 = vsyncadd [#allocation7], 4294961152  ;;  %v2261_v0 = vmov 0.0   ;;  %v2108_v1 = vld [vmem:[#allocation6 + $0x40] sm:$0xff]   ;;  %v2109_v2 = vld [vmem:[#allocation6 + $0x48] sm:$0xff]   ;;  %vm111_vm0 = vcmask 1046528  }
  0x38   :  { %69 = vst [vmem:[#allocation2] sm:$0x1] %v2261_v0  ;;  %71 = vst [vmem:[#allocation2 + $0x11] sm:$0x1] %v2261_v0  ;;  %1948 = vmatprep.subr.bf16.mxu0 %v2108_v1  ;;  %v2110_v3 = vld [vmem:[#allocation6 + $0x50] sm:$0xff]   ;;  %v2111_v4 = vld [vmem:[#allocation6 + $0x58] sm:$0xff]  }
  0x39   :  { %70 = vst [vmem:[#allocation2 + $0x18] sm:$0x1] %v2261_v0  ;;  %72 = vst [vmem:[#allocation2 + $0x29] sm:$0x1] %v2261_v0  ;;  %1949 = vmatpush3.bf16.msra.mxu0 %v2108_v1  ;;  %v2367_v5 = vld [vmem:[#allocation3] sm:$0xff]  ;;  %v2369_v6 = vld [vmem:[#allocation3 + $0x8] sm:$0xff] }
  0x3a   :  { %1950 = vmatprep.subr.bf16.mxu0 %v2109_v2  ;;  %77 = vst [vmem:[#allocation2 + $0x1] sm:$0xff] %v2367_v5  ;;  %78 = vst [vmem:[#allocation2 + $0x9] sm:$0xff] %v2369_v6  ;;  %v2373_v7 = vld [vmem:[#allocation3 + $0x10] sm:$0xff]  ;;  %v2375_v8 = vld [vmem:[#allocation3 + $0x18] sm:$0xff]  ;;  %vm339_vm1 = vcmask 1045504   ;;  %vm496_vm2 = vcmask 1040384  }
  0x3b   :  { %79 = vst [vmem:[#allocation2 + $0x19] sm:$0xff] %v2373_v7  ;;  %80 = vst [vmem:[#allocation2 + $0x21] sm:$0xff] %v2375_v8  ;;  %v2112_v9 = vld [vmem:[#allocation6 + $0x60] sm:$0xff]   ;;  %v2113_v10 = vld [vmem:[#allocation6 + $0x68] sm:$0xff]   ;;  %s2262_s4 = smov 104   ;;  %s2263_s12 = smov 120  }
  0x3c   :  { %v2114_v17 = vld [vmem:[#allocation6 + $0x70] sm:$0xff]   ;;  %v2115_v27 = vld [vmem:[#allocation6 + $0x78] sm:$0xff]   ;;  %v2116_v28 = vld [vmem:[#allocation6] sm:$0xff]   ;;  %s2264_s18 = smov 96   ;;  %s2265_s19 = smov 112   ;;  %vm644_vm3 = vcmask 64512  }
  0x3d   :  { %1951 = vmatpush3.bf16.msra.mxu0 %v2109_v2  ;;  %v2117_v32 = vld [vmem:[#allocation6 + $0x8] sm:$0xff]   ;;  %v2118_v34 = vld [vmem:[#allocation6 + $0x10] sm:$0xff]   ;;  %v2119_v35 = vld [vmem:[#allocation6 + $0x18] sm:$0xff]   ;;  %s2266_s20 = smov 80   ;;  %s2267_s21 = smov 88   ;;  %vm2776_vm4 = vcmask 130048  }
  0x3e   :  { %1952 = vmatprep.subr.bf16.mxu0 %v2110_v3  ;;  %v2120_v36 = vld [vmem:[#allocation6 + $0x20] sm:$0xff]   ;;  %v2121_v37 = vld [vmem:[#allocation6 + $0x28] sm:$0xff]   ;;  %v2122_v38 = vld [vmem:[#allocation6 + $0x30] sm:$0xff]   ;;  %s2268_s22 = smov 72   ;;  %s2269_s23 = smov 48   ;;  %vm2775_vm5 = vcmask 195584  }
  0x3f   :  { %v2123_v39 = vld [vmem:[#allocation6 + $0x38] sm:$0xff]   ;;  %v2124_v43 = vld [vmem:[#allocation6 + $0x80] sm:$0xff]   ;;  %v2125_v48 = vld [vmem:[#allocation6 + $0x88] sm:$0xff]   ;;  %s2270_s24 = smov 56   ;;  %s2271_s26 = smov 32   ;;  %vm788_vm6 = vcmask 261120  }
  0x40   :  { %v2126_v49 = vld [vmem:[#allocation6 + $0x90] sm:$0xff]   ;;  %v2127_v50 = vld [vmem:[#allocation6 + $0x98] sm:$0xff]   ;;  %v2128_v51 = vld [vmem:[#allocation6 + $0xa0] sm:$0xff]   ;;  %s2272_s27 = smov 40   ;;  %s2273_s28 = smov 16   ;;  %vm790_vm7 = vcmask 326656  }
  0x41   :  { %1953 = vmatpush3.bf16.msra.mxu0 %v2110_v3  ;;  %v81_v11 = vld [vmem:[#allocation2] sm:$0xff]  ;;  %v82_v12 = vld [vmem:[#allocation2 + $0x8] sm:$0xff]  ;;  %v83_v13 = vld [vmem:[#allocation2 + $0x10] sm:$0x3]  ;;  %s2274_s29 = smov 24   ;;  %vm792_vm8 = vcmask 392192  }
  0x42   :  { %1954 = vmatprep.subr.bf16.mxu0 %v2111_v4  ;;  %v112_v14 = vrot.slane %v81_v11, 1  ;;  %v113_v15 = vrot.slane %v82_v12, 1  ;;  %v115_v16 = vrot.slane %v83_v13, 1  ;;  %v2379_v18 = vld [vmem:[#allocation2 + $0x18] sm:$0xff]  ;;  %v2383_v21 = vld [vmem:[#allocation2 + $0x20] sm:$0xff]  ;;  %v87_v33 = vpack.c.bf16 %v82_v12, %v81_v11  ;;  %v2131_v57 = vld [vmem:[#allocation6 + $0xb8] sm:$0xff]  }
  0x43   :  { %v2385_v23 = vld [vmem:[#allocation2 + $0x28] sm:$0x3]  ;;  %v117_v24 = vrot.slane %v2379_v18, 1  ;;  %v118_v25 = vrot.slane %v2383_v21, 1  ;;  %v340_v40 = vrot.slane %v81_v11, 2  ;;  %v341_v41 = vrot.slane %v82_v12, 2 }
  0x44   :  { %v114_v19 = vsel %vm111_vm0, %v112_v14, %v113_v15  ;;  %v116_v20 = vsel %vm111_vm0, %v113_v15, %v115_v16  ;;  %v120_v26 = vrot.slane %v2385_v23, 1  ;;  %v343_v42 = vrot.slane %v83_v13, 2  ;;  %v2129_v52 = vld [vmem:[#allocation6 + $0xa8] sm:$0xff]   ;;  %v2130_v53 = vld [vmem:[#allocation6 + $0xb0] sm:$0xff]  }
  0x45   :  { %1955 = vmatpush3.bf16.msra.mxu0 %v2111_v4  ;;  %v126_v22 = vpack.c.bf16 %v116_v20, %v114_v19  ;;  %v119_v29 = vsel %vm111_vm0, %v117_v24, %v118_v25  ;;  %v342_v44 = vsel %vm339_vm1, %v340_v40, %v341_v41  ;;  %v88_v46 = vpack.c.bf16 %v2383_v21, %v2379_v18 }
  0x46   :  { %1956 = vmatprep.subr.bf16.mxu0 %v2112_v9  ;;  %v121_v30 = vsel %vm111_vm0, %v118_v25, %v120_v26  ;;  %v344_v45 = vsel %vm339_vm1, %v341_v41, %v343_v42  ;;  %v345_v54 = vrot.slane %v2379_v18, 2  ;;  %v346_v55 = vrot.slane %v2383_v21, 2 }
  0x47   :  { %1964 = vmatprep.mubr.bf16.mxu0 %v126_v22  ;;  %v127_v31 = vpack.c.bf16 %v121_v30, %v119_v29  ;;  %v354_v47 = vpack.c.bf16 %v344_v45, %v342_v44  ;;  %v348_v56 = vrot.slane %v2385_v23, 2  ;;  %vm794_vm9 = vcmask 457728  }
  0x48   :  { %v347_v58 = vsel %vm339_vm1, %v345_v54, %v346_v55  ;;  %vm796_vm10 = vcmask 523264   ;;  %vm798_vm11 = vcmask 588800   ;;  %vm800_vm12 = vcmask 654336  }
  0x49   :  { %1957 = vmatpush3.bf16.msra.mxu0 %v2112_v9  ;;  %v349_v59 = vsel %vm339_vm1, %v346_v55, %v348_v56  ;;  %vm802_vm13 = vcmask 719872   ;;  %vm804_vm14 = vcmask 785408   ;;  %vm806_vm15 = vcmask 850944  }
  0x4a   :  { %1958 = vmatprep.subr.bf16.mxu0 %v2113_v10  ;;  %v355_v60 = vpack.c.bf16 %v349_v59, %v347_v58 }
  0x4d   :  { %1959 = vmatpush3.bf16.msra.mxu0 %v2113_v10 }
  0x4e   :  { %1960 = vmatprep.subr.bf16.mxu0 %v2114_v17 }
  0x51   :  { %1961 = vmatpush3.bf16.msra.mxu0 %v2114_v17 }
  0x52   :  { %1962 = vmatprep.subr.bf16.mxu0 %v2115_v27 }
  0x55   :  { %1963 = vmatpush3.bf16.msra.mxu0 %v2115_v27 }
  0x56   :  { %1968 = vmatprep.subr.bf16.mxu0 %v2116_v28 }
  0x58   :  { %1965 = vmatmul.mubr.bf16.vlgmr.msra.gmra.mrb[0].mxu0 %v127_v31 }
  0x59   :  { %1969 = vmatpush3.bf16.msra.mxu0 %v2116_v28  ;;  %1984 = vmatprep.mubr.bf16.mxu0 %v87_v33 }
  0x5a   :  { %1970 = vmatprep.subr.bf16.mxu0 %v2117_v32 }
  0x5d   :  { %1971 = vmatpush3.bf16.msra.mxu0 %v2117_v32 }
  0x5e   :  { %1972 = vmatprep.subr.bf16.mxu0 %v2118_v34 }
  0x61   :  { %1973 = vmatpush3.bf16.msra.mxu0 %v2118_v34 }
  0x62   :  { %1974 = vmatprep.subr.bf16.mxu0 %v2119_v35 }
  0x65   :  { %1975 = vmatpush3.bf16.msra.mxu0 %v2119_v35 }
  0x66   :  { %1976 = vmatprep.subr.bf16.mxu0 %v2120_v36 }
  0x69   :  { %1977 = vmatpush3.bf16.msra.mxu0 %v2120_v36 }
  0x6a   :  { %1978 = vmatprep.subr.bf16.mxu0 %v2121_v37 }
  0x6d   :  { %1979 = vmatpush3.bf16.msra.mxu0 %v2121_v37  ;;  %v2275_v37 = vmov 1983009808  }
  0x6e   :  { %1980 = vmatprep.subr.bf16.mxu0 %v2122_v38 }
  0x71   :  { %1981 = vmatpush3.bf16.msra.mxu0 %v2122_v38  ;;  %v546_v38 = vunpack.c.l.s4 %v2275_v37 }
  0x72   :  { %1982 = vmatprep.subr.bf16.mxu0 %v2123_v39 }
  0x73   :  { %v547_v42 = vunpack.c.0.s8 %v546_v38 }
  0x75   :  { %1983 = vmatpush3.bf16.msra.mxu0 %v2123_v39  ;;  %v548_v39 = vlaneseq }
  0x76   :  { %1988 = vmatprep.subr.bf16.mxu0 %v2124_v43 }
  0x78   :  { %1985 = vmatmul.mubr.bf16.vlgmr.msra.gmra.mrb[0].mxu0 %v88_v46 }
  0x79   :  { %1989 = vmatpush3.bf16.msra.mxu0 %v2124_v43  ;;  %2004 = vmatprep.mubr.bf16.mxu0 %v354_v47  ;;  %v2437_v43 = vshrl.u32 %v548_v39, 7 }
  0x7a   :  { %1990 = vmatprep.subr.bf16.mxu0 %v2125_v48 }
  0x7b   :  { %v2440_v47 = vsub.s32 %v547_v42, %v2437_v43 }
  0x7d   :  { %1991 = vmatpush3.bf16.msra.mxu0 %v2125_v48  ;;  %v2276_v48 = vmov 1934713408  }
  0x7e   :  { %1992 = vmatprep.subr.bf16.mxu0 %v2126_v49 }
  0x81   :  { %1993 = vmatpush3.bf16.msra.mxu0 %v2126_v49  ;;  %v578_v49 = vunpack.c.l.s4 %v2276_v48 }
  0x82   :  { %1994 = vmatprep.subr.bf16.mxu0 %v2127_v50 }
  0x85   :  { %1995 = vmatpush3.bf16.msra.mxu0 %v2127_v50 }
  0x86   :  { %1996 = vmatprep.subr.bf16.mxu0 %v2128_v51 }
  0x89   :  { %1997 = vmatpush3.bf16.msra.mxu0 %v2128_v51 }
  0x8a   :  { %1998 = vmatprep.subr.bf16.mxu0 %v2129_v52 }
  0x8d   :  { %1999 = vmatpush3.bf16.msra.mxu0 %v2129_v52 }
  0x8e   :  { %2000 = vmatprep.subr.bf16.mxu0 %v2130_v53 }
  0x91   :  { %2001 = vmatpush3.bf16.msra.mxu0 %v2130_v53 }
  0x92   :  { %2002 = vmatprep.subr.bf16.mxu0 %v2131_v57 }
  0x95   :  { %2003 = vmatpush3.bf16.msra.mxu0 %v2131_v57  ;;  %v579_v57 = vunpack.c.0.s8 %v578_v49 }
  0x98   :  { %2005 = vmatmul.mubr.bf16.vlgmr.msra.gmra.mrb[0].mxu0 %v355_v60 }
 0x16b   :  { %v2401_v61 = vpop.f32.mrb[0].mxu0 }
 0x16c   :  { %v2403_v62 = vpop.f32.mrb[1].mxu0  ;;  %v485_v9 = vmul.f32 %v2401_v61, %v2401_v61 }
 0x16d   :  { %v2405_v63 = vpop.f32.mrb[2].mxu0  ;;  %v483_v2 = vmul.f32 %v2403_v62, %v2403_v62 }
 0x16e   :  { %v2407_v1 = vpop.f32.mrb[3].mxu0  ;;  %v486_v12 = vmul.f32 %v2405_v63, %v2405_v63 }
 0x16f   :  { %v474_v3 = vadd.f32 %v2407_v1, %v2403_v62  ;;  %v484_v4 = vmul.f32 %v2407_v1, %v2407_v1 }
 0x171   :  { %v475_v10 = vadd.f32 %v2401_v61, %v474_v3  ;;  %v487_v11 = vadd.f32 %v484_v4, %v483_v2 }
 0x173   :  { %v476_v13 = vadd.f32 %v2405_v63, %v475_v10  ;;  %v488_v14 = vadd.f32 %v487_v11, %v485_v9  ;;  %v2448_v11 = vsub.s32 %v579_v57, %v2437_v43 }
 0x175   :  { %v477_v15 = vrot.slane %v476_v13, 4  ;;  %v489_v16 = vadd.f32 %v488_v14, %v486_v12 }
 0x177   :  { %v478_v17 = vadd.f32 %v477_v15, %v476_v13  ;;  %v490_v18 = vrot.slane %v489_v16, 4 }
 0x179   :  { %v479_v19 = vrot.slane %v478_v17, 2  ;;  %v491_v20 = vadd.f32 %v490_v18, %v489_v16 }
 0x17b   :  { %v480_v21 = vadd.f32 %v479_v19, %v478_v17  ;;  %v492_v22 = vrot.slane %v491_v20, 2 }
 0x17d   :  { %v481_v23 = vrot.slane %v480_v21, 1  ;;  %v493_v24 = vadd.f32 %v492_v22, %v491_v20 }
 0x17f   :  { %v494_v25 = vrot.slane %v493_v24, 1  ;;  %v482_v26 = vadd.f32 %v481_v23, %v480_v21 }
 0x181   :  { %v495_v27 = vadd.f32 %v494_v25, %v493_v24 }
 0x183   :  { %v497_v28 = vsel %vm496_vm2, %v482_v26, %v495_v27 }
 0x184   :  { %505 = vrot.lane.b32.xlu1 %v497_v28, %s2262_s4  ;;  %499 = vrot.lane.b32.xlu0 %v497_v28, %s2263_s12 }
 0x188   :  { %508 = vrot.lane.b32.xlu1 %v497_v28, %s2264_s18  ;;  %502 = vrot.lane.b32.xlu0 %v497_v28, %s2265_s19 }
 0x18c   :  { %514 = vrot.lane.b32.xlu1 %v497_v28, %s2266_s20  ;;  %511 = vrot.lane.b32.xlu0 %v497_v28, %s2267_s21 }
 0x190   :  { %520 = vrot.lane.b32.xlu1 %v497_v28, %s2255_s11  ;;  %517 = vrot.lane.b32.xlu0 %v497_v28, %s2268_s22 }
 0x194   :  { %526 = vrot.lane.b32.xlu1 %v497_v28, %s2269_s23  ;;  %523 = vrot.lane.b32.xlu0 %v497_v28, %s2270_s24 }
 0x198   :  { %532 = vrot.lane.b32.xlu1 %v497_v28, %s2271_s26  ;;  %529 = vrot.lane.b32.xlu0 %v497_v28, %s2272_s27 }
 0x19c   :  { %538 = vrot.lane.b32.xlu1 %v497_v28, %s2273_s28  ;;  %535 = vrot.lane.b32.xlu0 %v497_v28, %s2274_s29 }
 0x1a0   :  { %541 = vrot.lane.b32.xlu0 %v497_v28, %s2259_s25 }
 0x1f6   :  { %v506_v29 = vpop.permute.xlu1 %505  ;;  %v500_v30 = vpop.permute.xlu0 %499 }
 0x1f7   :  { %v552_v52 = vcombine.low %v500_v30, %v506_v29 }
 0x1f9   :  { %v559_v2 = vrot.slane %v552_v52, %v2440_v47  ;;  %v670_v52 = vld [vmem:[%s2769_s2] sm:$0x1] }
 0x1fa   :  { %v509_v31 = vpop.permute.xlu1 %508  ;;  %v503_v32 = vpop.permute.xlu0 %502 }
 0x1fb   :  { %v544_v50 = vcombine.low %v497_v28, %v503_v32 }
 0x1fd   :  { %v551_v58 = vrot.slane %v544_v50, %v2440_v47 }
 0x1fe   :  { %v515_v33 = vpop.permute.xlu1 %514  ;;  %v512_v34 = vpop.permute.xlu0 %511 }
 0x1ff   :  { %v560_v51 = vcombine.low %v509_v31, %v515_v33  ;;  %v576_v12 = vcombine.low %v551_v58, %v559_v2 }
 0x201   :  { %v567_v59 = vrot.slane %v560_v51, %v2440_v47  ;;  %v583_v19 = vrot.slane %v576_v12, %v2448_v11 }
 0x202   :  { %v521_v35 = vpop.permute.xlu1 %520  ;;  %v518_v36 = vpop.permute.xlu0 %517 }
 0x203   :  { %v568_v44 = vcombine.low %v512_v34, %v518_v36 }
 0x205   :  { %v575_v53 = vrot.slane %v568_v44, %v2440_v47 }
 0x206   :  { %v527_v40 = vpop.permute.xlu1 %526  ;;  %v524_v41 = vpop.permute.xlu0 %523 }
 0x207   :  { %v594_v60 = vcombine.low %v521_v35, %v527_v40  ;;  %v584_v3 = vcombine.low %v567_v59, %v575_v53  ;;  %v2465_v53 = vsub.s32 0, %v2437_v43 }
 0x209   :  { %v601_v13 = vrot.slane %v594_v60, %v2440_v47  ;;  %v591_v15 = vrot.slane %v584_v3, %v2448_v11 }
 0x20a   :  { %v533_v45 = vpop.permute.xlu1 %532  ;;  %v530_v46 = vpop.permute.xlu0 %529 }
 0x20b   :  { %v602_v54 = vcombine.low %v524_v41, %v530_v46  ;;  %v592_v21 = vcombine.low %v583_v19, %v591_v15  ;;  %v593_v22 = vcombine.high %v583_v19, %v591_v15 }
 0x20d   :  { %v609_v4 = vrot.slane %v602_v54, %v2440_v47  ;;  %v645_v27 = vsel %vm644_vm3, %v592_v21, 0.0  ;;  %v654_v28 = vsel %vm644_vm3, %v593_v22, 0.0 }
 0x20e   :  { %v539_v55 = vpop.permute.xlu1 %538  ;;  %v536_v56 = vpop.permute.xlu0 %535 }
 0x20f   :  { %v610_v9 = vcombine.low %v533_v45, %v539_v55  ;;  %v626_v16 = vcombine.low %v601_v13, %v609_v4 }
 0x211   :  { %v617_v17 = vrot.slane %v610_v9, %v2440_v47  ;;  %v633_v23 = vrot.slane %v626_v16, %v2448_v11 }
 0x212   :  { %v542_v10 = vpop.permute.xlu0 %541 }
 0x213   :  { %v618_v14 = vcombine.low %v536_v56, %v542_v10  ;;  %v672_v56 = vld [vmem:[%s2770_s3] sm:$0x1] }
 0x215   :  { %v625_v18 = vrot.slane %v618_v14, %v2440_v47 }
 0x217   :  { %v634_v20 = vcombine.low %v617_v17, %v625_v18 }
 0x219   :  { %v641_v24 = vrot.slane %v634_v20, %v2448_v11 }
 0x21b   :  { %v642_v25 = vcombine.low %v633_v23, %v641_v24  ;;  %v643_v26 = vcombine.high %v633_v23, %v641_v24 }
 0x21d   :  { %v646_v29 = vsel %vm644_vm3, %v642_v25, 0.0  ;;  %v655_v30 = vsel %vm644_vm3, %v643_v26, 0.0 }
 0x21e   :  { %v647_v31 = vadd.f32 %v646_v29, %v645_v27  ;;  %v656_v32 = vadd.f32 %v655_v30, %v654_v28  ;;  %v2132_v27 = vld [vmem:[#allocation8 + $0x40] sm:$0xff]   ;;  %v2133_v30 = vld [vmem:[#allocation8 + $0x48] sm:$0xff]  }
 0x21f   :  { %2008 = vmatprep.subr.bf16.mxu1 %v2132_v27 }
 0x220   :  { %v648_v33 = vrot.slane %v647_v31, 4  ;;  %v657_v34 = vrot.slane %v656_v32, 4  ;;  %2009 = vmatpush3.bf16.msra.mxu1 %v2132_v27 }
 0x221   :  { %2010 = vmatprep.subr.bf16.mxu1 %v2133_v30 }
 0x222   :  { %v649_v35 = vadd.f32 %v648_v33, %v647_v31  ;;  %v658_v36 = vadd.f32 %v657_v34, %v656_v32  ;;  %v2134_v32 = vld [vmem:[#allocation8 + $0x50] sm:$0xff]   ;;  %v2135_v34 = vld [vmem:[#allocation8 + $0x58] sm:$0xff]  }
 0x224   :  { %v650_v37 = vrot.slane %v649_v35, 2  ;;  %v659_v38 = vrot.slane %v658_v36, 2  ;;  %2011 = vmatpush3.bf16.msra.mxu1 %v2133_v30 }
 0x225   :  { %2012 = vmatprep.subr.bf16.mxu1 %v2134_v32 }
 0x226   :  { %v651_v39 = vadd.f32 %v650_v37, %v649_v35  ;;  %v660_v40 = vadd.f32 %v659_v38, %v658_v36  ;;  %v2136_v36 = vld [vmem:[#allocation8 + $0x60] sm:$0xff]   ;;  %v2137_v37 = vld [vmem:[#allocation8 + $0x68] sm:$0xff]   ;;  %v2138_v38 = vld [vmem:[#allocation8 + $0x70] sm:$0xff]  }
 0x228   :  { %v652_v41 = vrot.slane %v651_v39, 1  ;;  %v661_v42 = vrot.slane %v660_v40, 1  ;;  %2013 = vmatpush3.bf16.msra.mxu1 %v2134_v32 }
 0x229   :  { %2014 = vmatprep.subr.bf16.mxu1 %v2135_v34 }
 0x22a   :  { %v653_v44 = vadd.f32 %v652_v41, %v651_v39  ;;  %v662_v45 = vadd.f32 %v661_v42, %v660_v40  ;;  %v2139_v39 = vld [vmem:[#allocation8 + $0x78] sm:$0xff]   ;;  %v2536_v40 = vld [vmem:[#allocation8] sm:$0xff]  }
 0x22c   :  { %v664_v46 = vmul.f32 0.001953125, %v653_v44  ;;  %v665_v48 = vmul.f32 0.001953125, %v662_v45  ;;  %2015 = vmatpush3.bf16.msra.mxu1 %v2135_v34 }
 0x22d   :  { %2016 = vmatprep.subr.bf16.mxu1 %v2136_v36 }
 0x22e   :  { %v666_v49 = vmul.f32 %v664_v46, %v664_v46 }
 0x230   :  { %v667_v50 = vsub.f32 %v665_v48, %v666_v49  ;;  %2017 = vmatpush3.bf16.msra.mxu1 %v2136_v36 }
 0x231   :  { %2018 = vmatprep.subr.bf16.mxu1 %v2137_v37 }
 0x232   :  { %v668_v51 = vadd.f32 1e-05, %v667_v50 }
 0x234   :  { %2156 = vrsqrt.f32 %v668_v51  ;;  %2019 = vmatpush3.bf16.msra.mxu1 %v2137_v37 }
 0x235   :  { %2020 = vmatprep.subr.bf16.mxu1 %v2138_v38 }
 0x238   :  { %2021 = vmatpush3.bf16.msra.mxu1 %v2138_v38 }
 0x239   :  { %2022 = vmatprep.subr.bf16.mxu1 %v2139_v39 }
 0x23c   :  { %2023 = vmatpush3.bf16.msra.mxu1 %v2139_v39 }
 0x23d   :  { %2028 = vmatprep.subr.bf16.mxu1 %v2536_v40 }
 0x23e   :  { %v2157_v54 = vpop.eup %2156 }
 0x23f   :  { %v671_v55 = vmul.f32 %v2157_v54, %v670_v52 }
 0x241   :  { %v679_v57 = vrot.slane %v671_v55, %v2465_v53  ;;  %v673_v58 = vmul.f32 %v671_v55, %v664_v46 }
 0x243   :  { %v688_v59 = vrot.slane %v679_v57, %v2440_v47  ;;  %v674_v60 = vsub.f32 %v672_v56, %v673_v58  ;;  %v681_v4 = vcombine.high %v679_v57, %v2261_v0 }
 0x245   :  { %v2473_v2 = vrot.slane %v688_v59, %v2448_v11  ;;  %v696_v3 = vcombine.high %v688_v59, %v2261_v0  ;;  %v816_v43 = vrot.slane %v674_v60, %v2465_v53  ;;  %v695_v13 = vrot.slane %v681_v4, %v2440_v47 }
 0x247   :  { %759 = vrot.lane.b32.xlu1 %v2473_v2, %s2255_s11  ;;  %v710_v9 = vrot.slane %v696_v3, %v2448_v11  ;;  %v825_v10 = vrot.slane %v816_v43, %v2440_v47  ;;  %v726_v12 = vcombine.high %v2473_v2, %v2261_v0  ;;  %v718_v15 = vrot.slane %v695_v13, %v2448_v11 }
 0x248   :  { %v818_v18 = vcombine.high %v816_v43, %v2261_v0  ;;  %v711_v24 = vcombine.high %v695_v13, %v2261_v0 }
 0x249   :  { %735 = vrot.lane.b32.xlu0 %v710_v9, %s2273_s28  ;;  %v2488_v14 = vrot.slane %v825_v10, %v2448_v11  ;;  %v833_v17 = vcombine.high %v825_v10, %v2261_v0  ;;  %v727_v22 = vcombine.high %v710_v9, %v2261_v0  ;;  %v728_v23 = vcombine.high %v718_v15, %v2261_v0 }
 0x24a   :  { %v832_v20 = vrot.slane %v818_v18, %v2440_v47  ;;  %v725_v25 = vrot.slane %v711_v24, %v2448_v11 }
 0x24b   :  { %731 = vrot.lane.b32.xlu1 %v726_v12, %s2259_s25  ;;  %v863_v16 = vcombine.high %v2488_v14, %v2261_v0  ;;  %v847_v19 = vrot.slane %v833_v17, %v2448_v11 }
 0x24c   :  { %v855_v21 = vrot.slane %v832_v20, %v2448_v11  ;;  %v848_v29 = vcombine.high %v832_v20, %v2261_v0  ;;  %v729_v33 = vcombine.high %v725_v25, %v2261_v0 }
 0x24d   :  { %896 = vrot.lane.b32.xlu0 %v2488_v14, %s2255_s11  ;;  %v864_v26 = vcombine.high %v847_v19, %v2261_v0 }
 0x24e   :  { %v865_v28 = vcombine.high %v855_v21, %v2261_v0  ;;  %v862_v31 = vrot.slane %v848_v29, %v2448_v11 }
 0x24f   :  { %743 = vrot.lane.b32.xlu1 %v718_v15, %s2271_s26 }
 0x250   :  { %v866_v35 = vcombine.high %v862_v31, %v2261_v0 }
 0x251   :  { %868 = vrot.lane.b32.xlu0 %v863_v16, %s2259_s25 }
 0x253   :  { %762 = vrot.lane.b32.xlu1 %v726_v12, %s2268_s22 }
 0x255   :  { %872 = vrot.lane.b32.xlu0 %v847_v19, %s2273_s28 }
 0x257   :  { %765 = vrot.lane.b32.xlu1 %v710_v9, %s2266_s20 }
 0x259   :  { %880 = vrot.lane.b32.xlu0 %v855_v21, %s2271_s26 }
 0x25b   :  { %771 = vrot.lane.b32.xlu1 %v718_v15, %s2264_s18 }
 0x25d   :  { %899 = vrot.lane.b32.xlu0 %v863_v16, %s2268_s22 }
 0x25f   :  { %739 = vrot.lane.b32.xlu1 %v727_v22, %s2274_s29 }
 0x261   :  { %902 = vrot.lane.b32.xlu0 %v847_v19, %s2266_s20 }
 0x263   :  { %747 = vrot.lane.b32.xlu1 %v728_v23, %s2272_s27 }
 0x265   :  { %908 = vrot.lane.b32.xlu0 %v855_v21, %s2264_s18 }
 0x267   :  { %751 = vrot.lane.b32.xlu1 %v725_v25, %s2269_s23 }
 0x269   :  { %876 = vrot.lane.b32.xlu0 %v864_v26, %s2274_s29 }
 0x26b   :  { %768 = vrot.lane.b32.xlu1 %v727_v22, %s2267_s21 }
 0x26d   :  { %884 = vrot.lane.b32.xlu0 %v865_v28, %s2272_s27 }
 0x26f   :  { %774 = vrot.lane.b32.xlu1 %v728_v23, %s2262_s4 }
 0x271   :  { %888 = vrot.lane.b32.xlu0 %v862_v31, %s2269_s23 }
 0x273   :  { %755 = vrot.lane.b32.xlu1 %v729_v33, %s2270_s24 }
 0x275   :  { %905 = vrot.lane.b32.xlu0 %v864_v26, %s2267_s21 }
 0x277   :  { %777 = vrot.lane.b32.xlu1 %v725_v25, %s2265_s19 }
 0x279   :  { %892 = vrot.lane.b32.xlu0 %v866_v35, %s2270_s24 }
 0x27b   :  { %780 = vrot.lane.b32.xlu1 %v729_v33, %s2263_s12 }
 0x27d   :  { %911 = vrot.lane.b32.xlu0 %v865_v28, %s2262_s4 }
 0x27f   :  { %914 = vrot.lane.b32.xlu1 %v862_v31, %s2265_s19 }
 0x281   :  { %917 = vrot.lane.b32.xlu0 %v866_v35, %s2263_s12 }
 0x2b9   :  { %v760_v41 = vpop.permute.xlu1 %759 }
 0x2bb   :  { %v736_v42 = vpop.permute.xlu0 %735 }
 0x2bd   :  { %v732_v44 = vpop.permute.xlu1 %731 }
 0x2be   :  { %v783_v43 = vsel %vm644_vm3, %v2473_v2, %v732_v44 }
 0x2bf   :  { %v897_v45 = vpop.permute.xlu0 %896  ;;  %v785_v9 = vsel %vm2776_vm4, %v783_v43, %v736_v42 }
 0x2c1   :  { %v744_v46 = vpop.permute.xlu1 %743 }
 0x2c3   :  { %v869_v48 = vpop.permute.xlu0 %868 }
 0x2c4   :  { %v920_v17 = vsel %vm644_vm3, %v2488_v14, %v869_v48 }
 0x2c5   :  { %v763_v49 = vpop.permute.xlu1 %762 }
 0x2c7   :  { %v873_v50 = vpop.permute.xlu0 %872 }
 0x2c8   :  { %v921_v18 = vsel %vm2776_vm4, %v920_v17, %v873_v50  ;;  %vm2777_vm4 = vcmask 982016  }
 0x2c9   :  { %v766_v51 = vpop.permute.xlu1 %765 }
 0x2cb   :  { %v881_v52 = vpop.permute.xlu0 %880 }
 0x2cd   :  { %v772_v54 = vpop.permute.xlu1 %771 }
 0x2cf   :  { %v900_v55 = vpop.permute.xlu0 %899 }
 0x2d1   :  { %v740_v56 = vpop.permute.xlu1 %739 }
 0x2d2   :  { %v787_v12 = vsel %vm2775_vm5, %v785_v9, %v740_v56 }
 0x2d3   :  { %v903_v57 = vpop.permute.xlu0 %902  ;;  %v789_v15 = vsel %vm788_vm6, %v787_v12, %v744_v46 }
 0x2d5   :  { %v748_v58 = vpop.permute.xlu1 %747 }
 0x2d6   :  { %v791_v2 = vsel %vm790_vm7, %v789_v15, %v748_v58 }
 0x2d7   :  { %v909_v59 = vpop.permute.xlu0 %908 }
 0x2d9   :  { %v752_v60 = vpop.permute.xlu1 %751 }
 0x2da   :  { %v793_v19 = vsel %vm792_vm8, %v791_v2, %v752_v60 }
 0x2db   :  { %v877_v3 = vpop.permute.xlu0 %876 }
 0x2dc   :  { %v922_v21 = vsel %vm2775_vm5, %v921_v18, %v877_v3  ;;  %vm808_vm5 = vcmask 916480  }
 0x2dd   :  { %v769_v4 = vpop.permute.xlu1 %768  ;;  %v923_v25 = vsel %vm788_vm6, %v922_v21, %v881_v52 }
 0x2df   :  { %v885_v10 = vpop.permute.xlu0 %884 }
 0x2e0   :  { %v924_v28 = vsel %vm790_vm7, %v923_v25, %v885_v10 }
 0x2e1   :  { %v775_v13 = vpop.permute.xlu1 %774 }
 0x2e3   :  { %v889_v16 = vpop.permute.xlu0 %888 }
 0x2e4   :  { %v925_v30 = vsel %vm792_vm8, %v924_v28, %v889_v16 }
 0x2e5   :  { %v756_v20 = vpop.permute.xlu1 %755 }
 0x2e6   :  { %v795_v22 = vsel %vm794_vm9, %v793_v19, %v756_v20 }
 0x2e7   :  { %v797_v23 = vsel %vm796_vm10, %v795_v22, %v760_v41  ;;  %v906_v24 = vpop.permute.xlu0 %905 }
 0x2e8   :  { %v799_v14 = vsel %vm798_vm11, %v797_v23, %v763_v49 }
 0x2e9   :  { %v801_v26 = vsel %vm800_vm12, %v799_v14, %v766_v51  ;;  %v778_v27 = vpop.permute.xlu1 %777 }
 0x2ea   :  { %v803_v29 = vsel %vm802_vm13, %v801_v26, %v769_v4 }
 0x2eb   :  { %v805_v31 = vsel %vm804_vm14, %v803_v29, %v772_v54  ;;  %v893_v32 = vpop.permute.xlu0 %892  ;;  %v2141_v29 = vld [vmem:[#allocation8 + $0x8] sm:$0xff]  }
 0x2ec   :  { %v807_v33 = vsel %vm806_vm15, %v805_v31, %v775_v13  ;;  %v926_v34 = vsel %vm794_vm9, %v925_v30, %v893_v32 }
 0x2ed   :  { %v809_v35 = vsel %vm808_vm5, %v807_v33, %v778_v27  ;;  %v927_v36 = vsel %vm796_vm10, %v926_v34, %v897_v45  ;;  %v781_v37 = vpop.permute.xlu1 %780  ;;  %v2142_v34 = vld [vmem:[#allocation8 + $0x10] sm:$0xff]  }
 0x2ee   :  { %v928_v38 = vsel %vm798_vm11, %v927_v36, %v900_v55  ;;  %v811_v39 = vsel %vm2777_vm4, %v809_v35, %v781_v37  ;;  %v2143_v35 = vld [vmem:[#allocation8 + $0x18] sm:$0xff]   ;;  %v2144_v36 = vld [vmem:[#allocation8 + $0x20] sm:$0xff]   ;;  %v2145_v37 = vld [vmem:[#allocation8 + $0x28] sm:$0xff]  }
 0x2ef   :  { %v929_v41 = vsel %vm800_vm12, %v928_v38, %v903_v57  ;;  %v912_v42 = vpop.permute.xlu0 %911  ;;  %v938_v46 = vrot.slane %v811_v39, %v2465_v53  ;;  %v2146_v38 = vld [vmem:[#allocation8 + $0x30] sm:$0xff]   ;;  %v2147_v39 = vld [vmem:[#allocation8 + $0x38] sm:$0xff]  }
 0x2f0   :  { %v930_v44 = vsel %vm802_vm13, %v929_v41, %v906_v24 }
 0x2f1   :  { %v915_v48 = vpop.permute.xlu1 %914  ;;  %v931_v49 = vsel %vm804_vm14, %v930_v44, %v909_v59  ;;  %v939_v52 = vmul.f32 %v938_v46, %v2403_v62  ;;  %v940_v55 = vmul.f32 %v938_v46, %v2407_v1  ;;  %v941_v56 = vmul.f32 %v2401_v61, %v938_v46  ;;  %v2148_v44 = vld [vmem:[#allocation8 + $0x80] sm:$0xff]  }
 0x2f2   :  { %v932_v50 = vsel %vm806_vm15, %v931_v49, %v912_v42  ;;  %v942_v57 = vmul.f32 %v2405_v63, %v938_v46 }
 0x2f3   :  { %v918_v51 = vpop.permute.xlu0 %917  ;;  %v933_v45 = vsel %vm808_vm5, %v932_v50, %v915_v48  ;;  %v2149_v50 = vld [vmem:[#allocation8 + $0x88] sm:$0xff]  }
 0x2f4   :  { %v934_v54 = vsel %vm2777_vm4, %v933_v45, %v918_v51  ;;  %v2150_v45 = vld [vmem:[#allocation8 + $0x90] sm:$0xff]  }
 0x2f5   :  { %v946_v58 = vrot.slane %v934_v54, %v2465_v53  ;;  %v2152_v54 = vld [vmem:[#allocation8 + $0xa0] sm:$0xff]  }
 0x2f7   :  { %v947_v60 = vadd.f32 %v946_v58, %v939_v52  ;;  %v948_v3 = vadd.f32 %v946_v58, %v940_v55  ;;  %v949_v59 = vadd.f32 %v946_v58, %v941_v56  ;;  %v950_v43 = vadd.f32 %v946_v58, %v942_v57  ;;  %v2151_v52 = vld [vmem:[#allocation8 + $0x98] sm:$0xff]   ;;  %v2153_v55 = vld [vmem:[#allocation8 + $0xa8] sm:$0xff]   ;;  %v2154_v56 = vld [vmem:[#allocation8 + $0xb0] sm:$0xff]  }
 0x2f8   :  { %v2155_v57 = vld [vmem:[#allocation8 + $0xb8] sm:$0xff]  }
 0x2f9   :  { %v951_v4 = vmax.f32 %v947_v60, 0.0  ;;  %v952_v9 = vmax.f32 %v948_v3, 0.0  ;;  %v953_v10 = vmax.f32 %v949_v59, 0.0  ;;  %v954_v12 = vmax.f32 %v950_v43, 0.0 }
 0x2fb   :  { %955 = vst [vmem:[#allocation2 + $0x1] sm:$0xff] %v951_v4  ;;  %956 = vst [vmem:[#allocation2 + $0x9] sm:$0xff] %v952_v9 }
 0x2fc   :  { %957 = vst [vmem:[#allocation2 + $0x19] sm:$0xff] %v953_v10  ;;  %958 = vst [vmem:[#allocation2 + $0x21] sm:$0xff] %v954_v12 }
 0x302   :  { %v959_v62 = vld [vmem:[#allocation2] sm:$0xff]  ;;  %v960_v1 = vld [vmem:[#allocation2 + $0x8] sm:$0xff]  ;;  %v961_v13 = vld [vmem:[#allocation2 + $0x10] sm:$0x3] }
 0x303   :  { %v989_v61 = vrot.slane %v959_v62, 1  ;;  %v990_v15 = vrot.slane %v960_v1, 1  ;;  %v992_v63 = vrot.slane %v961_v13, 1  ;;  %v962_v16 = vld [vmem:[#allocation2 + $0x18] sm:$0xff]  ;;  %v963_v17 = vld [vmem:[#allocation2 + $0x20] sm:$0xff]  ;;  %v965_v30 = vpack.c.bf16 %v960_v1, %v959_v62 }
 0x304   :  { %v964_v2 = vld [vmem:[#allocation2 + $0x28] sm:$0x3]  ;;  %v994_v18 = vrot.slane %v962_v16, 1  ;;  %v995_v19 = vrot.slane %v963_v17, 1  ;;  %v1221_v26 = vrot.slane %v962_v16, 2  ;;  %v1222_v27 = vrot.slane %v963_v17, 2 }
 0x305   :  { %v991_v20 = vsel %vm111_vm0, %v989_v61, %v990_v15  ;;  %v993_v21 = vsel %vm111_vm0, %v990_v15, %v992_v63  ;;  %v997_v22 = vrot.slane %v964_v2, 1  ;;  %v1224_v23 = vrot.slane %v964_v2, 2 }
 0x306   :  { %v1003_v24 = vpack.c.bf16 %v993_v21, %v991_v20  ;;  %v996_v14 = vsel %vm111_vm0, %v994_v18, %v995_v19  ;;  %v1223_v31 = vsel %vm339_vm1, %v1221_v26, %v1222_v27  ;;  %v1219_v41 = vrot.slane %v961_v13, 2 }
 0x307   :  { %v998_v25 = vsel %vm111_vm0, %v995_v19, %v997_v22  ;;  %v1225_v32 = vsel %vm339_vm1, %v1222_v27, %v1224_v23  ;;  %v1217_v42 = vrot.slane %v960_v1, 2  ;;  %v966_v49 = vpack.c.bf16 %v963_v17, %v962_v16 }
 0x308   :  { %2024 = vmatprep.mubr.bf16.mxu1 %v1003_v24  ;;  %v1004_v28 = vpack.c.bf16 %v998_v25, %v996_v14  ;;  %v1231_v33 = vpack.c.bf16 %v1225_v32, %v1223_v31  ;;  %vm2778_vm0 = vcmask 130048  }
 0x309   :  { %v1220_v48 = vsel %vm339_vm1, %v1217_v42, %v1219_v41 }
 0x30a   :  { %2025 = vmatmul.mubr.bf16.vlgmr.msra.gmra.mrb[0].mxu1 %v1004_v28 }
 0x30b   :  { %2029 = vmatpush3.bf16.msra.mxu1 %v2536_v40  ;;  %2044 = vmatprep.mubr.bf16.mxu1 %v965_v30  ;;  %v1216_v40 = vrot.slane %v959_v62, 2 }
 0x30c   :  { %2030 = vmatprep.subr.bf16.mxu1 %v2141_v29 }
 0x30d   :  { %v1218_v46 = vsel %vm339_vm1, %v1216_v40, %v1217_v42  ;;  %vm2779_vm1 = vcmask 195584  }
 0x30e   :  { %v1230_v51 = vpack.c.bf16 %v1220_v48, %v1218_v46  ;;  %vm2781_vm4 = vmmov %vm2779_vm1 }
 0x30f   :  { %2031 = vmatpush3.bf16.msra.mxu1 %v2141_v29 }
 0x310   :  { %2032 = vmatprep.subr.bf16.mxu1 %v2142_v34 }
 0x313   :  { %2033 = vmatpush3.bf16.msra.mxu1 %v2142_v34 }
 0x314   :  { %2034 = vmatprep.subr.bf16.mxu1 %v2143_v35 }
 0x317   :  { %2035 = vmatpush3.bf16.msra.mxu1 %v2143_v35 }
 0x318   :  { %2036 = vmatprep.subr.bf16.mxu1 %v2144_v36 }
 0x31b   :  { %2037 = vmatpush3.bf16.msra.mxu1 %v2144_v36 }
 0x31c   :  { %2038 = vmatprep.subr.bf16.mxu1 %v2145_v37 }
 0x31f   :  { %2039 = vmatpush3.bf16.msra.mxu1 %v2145_v37 }
 0x320   :  { %2040 = vmatprep.subr.bf16.mxu1 %v2146_v38 }
 0x323   :  { %2041 = vmatpush3.bf16.msra.mxu1 %v2146_v38 }
 0x324   :  { %2042 = vmatprep.subr.bf16.mxu1 %v2147_v39 }
 0x327   :  { %2043 = vmatpush3.bf16.msra.mxu1 %v2147_v39 }
 0x328   :  { %2048 = vmatprep.subr.bf16.mxu1 %v2148_v44 }
 0x32a   :  { %2045 = vmatmul.mubr.bf16.vlgmr.msra.gmra.mrb[0].mxu1 %v966_v49 }
 0x32b   :  { %2049 = vmatpush3.bf16.msra.mxu1 %v2148_v44  ;;  %2064 = vmatprep.mubr.bf16.mxu1 %v1230_v51 }
 0x32c   :  { %2050 = vmatprep.subr.bf16.mxu1 %v2149_v50 }
 0x32f   :  { %2051 = vmatpush3.bf16.msra.mxu1 %v2149_v50 }
 0x330   :  { %2052 = vmatprep.subr.bf16.mxu1 %v2150_v45 }
 0x333   :  { %2053 = vmatpush3.bf16.msra.mxu1 %v2150_v45 }
 0x334   :  { %2054 = vmatprep.subr.bf16.mxu1 %v2151_v52 }
 0x337   :  { %2055 = vmatpush3.bf16.msra.mxu1 %v2151_v52 }
 0x338   :  { %2056 = vmatprep.subr.bf16.mxu1 %v2152_v54 }
 0x33b   :  { %2057 = vmatpush3.bf16.msra.mxu1 %v2152_v54 }
 0x33c   :  { %2058 = vmatprep.subr.bf16.mxu1 %v2153_v55 }
 0x33f   :  { %2059 = vmatpush3.bf16.msra.mxu1 %v2153_v55 }
 0x340   :  { %2060 = vmatprep.subr.bf16.mxu1 %v2154_v56 }
 0x343   :  { %2061 = vmatpush3.bf16.msra.mxu1 %v2154_v56 }
 0x344   :  { %2062 = vmatprep.subr.bf16.mxu1 %v2155_v57 }
 0x347   :  { %2063 = vmatpush3.bf16.msra.mxu1 %v2155_v57 }
 0x34a   :  { %2065 = vmatmul.mubr.bf16.vlgmr.msra.gmra.mrb[0].mxu1 %v1231_v33 }
 0x41d   :  { %v2586_v58 = vpop.f32.mrb[0].mxu1 }
 0x41e   :  { %v2588_v60 = vpop.f32.mrb[1].mxu1  ;;  %v1361_v10 = vmul.f32 %v2586_v58, %v2586_v58 }
 0x41f   :  { %v2590_v3 = vpop.f32.mrb[2].mxu1  ;;  %v1359_v43 = vmul.f32 %v2588_v60, %v2588_v60 }
 0x420   :  { %v2592_v59 = vpop.f32.mrb[3].mxu1  ;;  %v1362_v1 = vmul.f32 %v2590_v3, %v2590_v3 }
 0x421   :  { %v1350_v4 = vadd.f32 %v2592_v59, %v2588_v60  ;;  %v1360_v9 = vmul.f32 %v2592_v59, %v2592_v59 }
 0x423   :  { %v1351_v12 = vadd.f32 %v2586_v58, %v1350_v4  ;;  %v1363_v62 = vadd.f32 %v1360_v9, %v1359_v43 }
 0x425   :  { %v1352_v13 = vadd.f32 %v2590_v3, %v1351_v12  ;;  %v1364_v61 = vadd.f32 %v1363_v62, %v1361_v10 }
 0x427   :  { %v1353_v15 = vrot.slane %v1352_v13, 4  ;;  %v1365_v63 = vadd.f32 %v1364_v61, %v1362_v1 }
 0x429   :  { %v1354_v16 = vadd.f32 %v1353_v15, %v1352_v13  ;;  %v1366_v17 = vrot.slane %v1365_v63, 4 }
 0x42b   :  { %v1355_v2 = vrot.slane %v1354_v16, 2  ;;  %v1367_v18 = vadd.f32 %v1366_v17, %v1365_v63 }
 0x42d   :  { %v1356_v19 = vadd.f32 %v1355_v2, %v1354_v16  ;;  %v1368_v20 = vrot.slane %v1367_v18, 2 }
 0x42f   :  { %v1357_v21 = vrot.slane %v1356_v19, 1  ;;  %v1369_v22 = vadd.f32 %v1368_v20, %v1367_v18 }
 0x431   :  { %v1370_v23 = vrot.slane %v1369_v22, 1  ;;  %v1358_v24 = vadd.f32 %v1357_v21, %v1356_v19 }
 0x433   :  { %v1371_v14 = vadd.f32 %v1370_v23, %v1369_v22 }
 0x435   :  { %v1372_v25 = vsel %vm496_vm2, %v1358_v24, %v1371_v14  ;;  %vm2780_vm2 = vmmov %vm2778_vm0 }
 0x436   :  { %1377 = vrot.lane.b32.xlu0 %v1372_v25, %s2265_s19  ;;  %1374 = vrot.lane.b32.xlu1 %v1372_v25, %s2263_s12 }
 0x43a   :  { %1383 = vrot.lane.b32.xlu0 %v1372_v25, %s2264_s18  ;;  %1380 = vrot.lane.b32.xlu1 %v1372_v25, %s2262_s4 }
 0x43e   :  { %1389 = vrot.lane.b32.xlu0 %v1372_v25, %s2266_s20  ;;  %1386 = vrot.lane.b32.xlu1 %v1372_v25, %s2267_s21 }
 0x442   :  { %1395 = vrot.lane.b32.xlu0 %v1372_v25, %s2255_s11  ;;  %1392 = vrot.lane.b32.xlu1 %v1372_v25, %s2268_s22 }
 0x446   :  { %1401 = vrot.lane.b32.xlu0 %v1372_v25, %s2269_s23  ;;  %1398 = vrot.lane.b32.xlu1 %v1372_v25, %s2270_s24 }
 0x44a   :  { %1407 = vrot.lane.b32.xlu0 %v1372_v25, %s2271_s26  ;;  %1404 = vrot.lane.b32.xlu1 %v1372_v25, %s2272_s27 }
 0x44e   :  { %1413 = vrot.lane.b32.xlu0 %v1372_v25, %s2273_s28  ;;  %1410 = vrot.lane.b32.xlu1 %v1372_v25, %s2274_s29 }
 0x452   :  { %1416 = vrot.lane.b32.xlu1 %v1372_v25, %s2259_s25 }
 0x4a8   :  { %v1378_v26 = vpop.permute.xlu0 %1377  ;;  %v1375_v27 = vpop.permute.xlu1 %1374 }
 0x4a9   :  { %v1419_v40 = vcombine.low %v1372_v25, %v1378_v26 }
 0x4ab   :  { %v1426_v45 = vrot.slane %v1419_v40, %v2440_v47 }
 0x4ac   :  { %v1384_v28 = vpop.permute.xlu0 %1383  ;;  %v1381_v29 = vpop.permute.xlu1 %1380 }
 0x4ad   :  { %v1427_v39 = vcombine.low %v1375_v27, %v1381_v29 }
 0x4af   :  { %v1434_v49 = vrot.slane %v1427_v39, %v2440_v47 }
 0x4b0   :  { %v1390_v30 = vpop.permute.xlu0 %1389  ;;  %v1387_v31 = vpop.permute.xlu1 %1386 }
 0x4b1   :  { %v1435_v41 = vcombine.low %v1384_v28, %v1390_v30  ;;  %v1451_v57 = vcombine.low %v1426_v45, %v1434_v49 }
 0x4b3   :  { %v1442_v50 = vrot.slane %v1435_v41, %v2440_v47  ;;  %v1458_v1 = vrot.slane %v1451_v57, %v2448_v11  ;;  %v1543_v41 = vld [vmem:[%s2772_s5] sm:$0x1]  ;;  %s2277_s5 = smov [#allocation9]  }
 0x4b4   :  { %v1396_v32 = vpop.permute.xlu0 %1395  ;;  %v1393_v33 = vpop.permute.xlu1 %1392 }
 0x4b5   :  { %v1443_v36 = vcombine.low %v1387_v31, %v1393_v33 }
 0x4b7   :  { %v1450_v42 = vrot.slane %v1443_v36, %v2440_v47 }
 0x4b8   :  { %v1402_v34 = vpop.permute.xlu0 %1401  ;;  %v1399_v35 = vpop.permute.xlu1 %1398 }
 0x4b9   :  { %v1469_v51 = vcombine.low %v1396_v32, %v1402_v34  ;;  %v1459_v52 = vcombine.low %v1442_v50, %v1450_v42 }
 0x4bb   :  { %v1476_v43 = vrot.slane %v1469_v51, %v2440_v47  ;;  %v1466_v9 = vrot.slane %v1459_v52, %v2448_v11 }
 0x4bc   :  { %v1408_v37 = vpop.permute.xlu0 %1407  ;;  %v1405_v38 = vpop.permute.xlu1 %1404 }
 0x4bd   :  { %v1477_v44 = vcombine.low %v1399_v35, %v1405_v38  ;;  %v1467_v61 = vcombine.low %v1458_v1, %v1466_v9  ;;  %v1468_v15 = vcombine.high %v1458_v1, %v1466_v9 }
 0x4bf   :  { %v1484_v54 = vrot.slane %v1477_v44, %v2440_v47  ;;  %v1519_v18 = vsel %vm644_vm3, %v1467_v61, 0.0  ;;  %v1528_v19 = vsel %vm644_vm3, %v1468_v15, 0.0  ;;  %v1545_v44 = vld [vmem:[%s2773_s6] sm:$0x1]  ;;  %s1827_s6 = sshll.u32 %s2277_s5, 4  ;;  %s1828_s6 = int_to_ptr.vmem [resolvable:$true] %s1827_s6 }
 0x4c0   :  { %v1414_v46 = vpop.permute.xlu0 %1413  ;;  %v1411_v48 = vpop.permute.xlu1 %1410  ;;  %p2231_p11 = scmp.lt.s32.totalorder %s1828_s6, %s1828_s6 }
 0x4c1   :  { %v1485_v55 = vcombine.low %v1408_v37, %v1414_v46  ;;  %v1501_v10 = vcombine.low %v1476_v43, %v1484_v54 }
 0x4c3   :  { %v1492_v12 = vrot.slane %v1485_v55, %v2440_v47  ;;  %v1508_v63 = vrot.slane %v1501_v10, %v2448_v11 }
 0x4c4   :  { %v1417_v56 = vpop.permute.xlu1 %1416 }
 0x4c5   :  { %v1493_v4 = vcombine.low %v1411_v48, %v1417_v56 }
 0x4c7   :  { %v1500_v62 = vrot.slane %v1493_v4, %v2440_v47 }
 0x4c9   :  { %v1509_v13 = vcombine.low %v1492_v12, %v1500_v62 }
 0x4cb   :  { %v1516_v16 = vrot.slane %v1509_v13, %v2448_v11 }
 0x4cd   :  { %v1517_v17 = vcombine.low %v1508_v63, %v1516_v16  ;;  %v1518_v2 = vcombine.high %v1508_v63, %v1516_v16 }
 0x4cf   :  { %v1520_v20 = vsel %vm644_vm3, %v1517_v17, 0.0  ;;  %v1529_v21 = vsel %vm644_vm3, %v1518_v2, 0.0 }
 0x4d0   :  { %v1521_v22 = vadd.f32 %v1520_v20, %v1519_v18  ;;  %v1530_v23 = vadd.f32 %v1529_v21, %v1528_v19 }
 0x4d2   :  { %v1522_v24 = vrot.slane %v1521_v22, 4  ;;  %v1531_v14 = vrot.slane %v1530_v23, 4 }
 0x4d4   :  { %v1523_v25 = vadd.f32 %v1522_v24, %v1521_v22  ;;  %v1532_v26 = vadd.f32 %v1531_v14, %v1530_v23 }
 0x4d6   :  { %v1524_v27 = vrot.slane %v1523_v25, 2  ;;  %v1533_v28 = vrot.slane %v1532_v26, 2 }
 0x4d8   :  { %v1525_v29 = vadd.f32 %v1524_v27, %v1523_v25  ;;  %v1534_v30 = vadd.f32 %v1533_v28, %v1532_v26 }
 0x4da   :  { %v1526_v31 = vrot.slane %v1525_v29, 1  ;;  %v1535_v32 = vrot.slane %v1534_v30, 1 }
 0x4dc   :  { %v1527_v33 = vadd.f32 %v1526_v31, %v1525_v29  ;;  %v1536_v34 = vadd.f32 %v1535_v32, %v1534_v30 }
 0x4de   :  { %v1537_v35 = vmul.f32 0.001953125, %v1527_v33  ;;  %v1538_v36 = vmul.f32 0.001953125, %v1536_v34 }
 0x4e0   :  { %v1539_v37 = vmul.f32 %v1537_v35, %v1537_v35 }
 0x4e2   :  { %v1540_v38 = vsub.f32 %v1538_v36, %v1539_v37 }
 0x4e4   :  { %v1541_v39 = vadd.f32 1e-05, %v1540_v38 }
 0x4e6   :  { %2158 = vrsqrt.f32 %v1541_v39 }
 0x4f0   :  { %v2159_v40 = vpop.eup %2158 }
 0x4f1   :  { %v1544_v42 = vmul.f32 %v2159_v40, %v1543_v41 }
 0x4f3   :  { %v1552_v46 = vrot.slane %v1544_v42, %v2465_v53  ;;  %v1546_v48 = vmul.f32 %v1544_v42, %v1537_v35 }
 0x4f5   :  { %v1561_v49 = vrot.slane %v1552_v46, %v2440_v47  ;;  %v1547_v50 = vsub.f32 %v1545_v44, %v1546_v48  ;;  %v1554_v54 = vcombine.high %v1552_v46, %v2261_v0 }
 0x4f7   :  { %v2647_v51 = vrot.slane %v1561_v49, %v2448_v11  ;;  %v1569_v45 = vcombine.high %v1561_v49, %v2261_v0  ;;  %v1675_v52 = vrot.slane %v1547_v50, %v2465_v53  ;;  %v1568_v43 = vrot.slane %v1554_v54, %v2440_v47 }
 0x4f9   :  { %1632 = vrot.lane.b32.xlu0 %v2647_v51, %s2255_s11  ;;  %v1583_v55 = vrot.slane %v1569_v45, %v2448_v11  ;;  %v1684_v56 = vrot.slane %v1675_v52, %v2440_v47  ;;  %v1599_v57 = vcombine.high %v2647_v51, %v2261_v0  ;;  %v1591_v9 = vrot.slane %v1568_v43, %v2448_v11 }
 0x4fa   :  { %v1677_v62 = vcombine.high %v1675_v52, %v2261_v0  ;;  %v1584_v63 = vcombine.high %v1568_v43, %v2261_v0 }
 0x4fb   :  { %1608 = vrot.lane.b32.xlu1 %v1583_v55, %s2273_s28  ;;  %v2662_v4 = vrot.slane %v1684_v56, %v2448_v11  ;;  %v1692_v12 = vcombine.high %v1684_v56, %v2261_v0  ;;  %v1600_v15 = vcombine.high %v1583_v55, %v2261_v0 }
 0x4fc   :  { %v1691_v13 = vrot.slane %v1677_v62, %v2440_v47  ;;  %v1601_v47 = vcombine.high %v1591_v9, %v2261_v0  ;;  %v1598_v16 = vrot.slane %v1584_v63, %v2448_v11 }
 0x4fd   :  { %1604 = vrot.lane.b32.xlu0 %v1599_v57, %s2259_s25  ;;  %v1722_v10 = vcombine.high %v2662_v4, %v2261_v0  ;;  %v1706_v1 = vrot.slane %v1692_v12, %v2448_v11 }
 0x4fe   :  { %v1714_v61 = vrot.slane %v1691_v13, %v2448_v11  ;;  %v1707_v18 = vcombine.high %v1691_v13, %v2261_v0  ;;  %v1602_v20 = vcombine.high %v1598_v16, %v2261_v0 }
 0x4ff   :  { %1755 = vrot.lane.b32.xlu1 %v2662_v4, %s2255_s11  ;;  %v1723_v17 = vcombine.high %v1706_v1, %v2261_v0  ;;  %s2226_s11 = scalar_lea.vmem %s1828_s6, 512 }
 0x500   :  { %v1724_v2 = vcombine.high %v1714_v61, %v2261_v0  ;;  %v1721_v19 = vrot.slane %v1707_v18, %v2448_v11  ;;  %p2227_p10 = scmp.ne.s32.totalorder %s1828_s6, %s2226_s11  ;;  %p2232_p12 = scmp.lt.s32.totalorder %s2226_s11, %s2226_s11 }
 0x501   :  { %1616 = vrot.lane.b32.xlu0 %v1591_v9, %s2271_s26 }
 0x502   :  { %v1725_v21 = vcombine.high %v1721_v19, %v2261_v0  ;;  %p2233_p13 = por %p2232_p12, %p2231_p11 }
 0x503   :  { %1727 = vrot.lane.b32.xlu1 %v1722_v10, %s2259_s25 }
 0x504   :  { %p2234_p0 = pnand %p2233_p13, %p2227_p10 }
 0x505   :  { %1635 = vrot.lane.b32.xlu0 %v1599_v57, %s2268_s22 }
 0x507   :  { %1731 = vrot.lane.b32.xlu1 %v1706_v1, %s2273_s28 }
 0x509   :  { %1638 = vrot.lane.b32.xlu0 %v1583_v55, %s2266_s20 }
 0x50b   :  { %1739 = vrot.lane.b32.xlu1 %v1714_v61, %s2271_s26 }
 0x50d   :  { %1644 = vrot.lane.b32.xlu0 %v1591_v9, %s2264_s18 }
 0x50f   :  { %1758 = vrot.lane.b32.xlu1 %v1722_v10, %s2268_s22 }
 0x511   :  { %1612 = vrot.lane.b32.xlu0 %v1600_v15, %s2274_s29 }
 0x513   :  { %1761 = vrot.lane.b32.xlu1 %v1706_v1, %s2266_s20 }
 0x515   :  { %1620 = vrot.lane.b32.xlu0 %v1601_v47, %s2272_s27 }
 0x517   :  { %1767 = vrot.lane.b32.xlu1 %v1714_v61, %s2264_s18 }
 0x519   :  { %1624 = vrot.lane.b32.xlu0 %v1598_v16, %s2269_s23 }
 0x51b   :  { %1735 = vrot.lane.b32.xlu1 %v1723_v17, %s2274_s29 }
 0x51d   :  { %1641 = vrot.lane.b32.xlu0 %v1600_v15, %s2267_s21 }
 0x51f   :  { %1743 = vrot.lane.b32.xlu1 %v1724_v2, %s2272_s27 }
 0x521   :  { %1647 = vrot.lane.b32.xlu0 %v1601_v47, %s2262_s4 }
 0x523   :  { %1747 = vrot.lane.b32.xlu1 %v1721_v19, %s2269_s23 }
 0x525   :  { %1628 = vrot.lane.b32.xlu0 %v1602_v20, %s2270_s24 }
 0x527   :  { %1764 = vrot.lane.b32.xlu1 %v1723_v17, %s2267_s21 }
 0x529   :  { %1650 = vrot.lane.b32.xlu0 %v1598_v16, %s2265_s19 }
 0x52b   :  { %1751 = vrot.lane.b32.xlu1 %v1725_v21, %s2270_s24 }
 0x52d   :  { %1653 = vrot.lane.b32.xlu0 %v1602_v20, %s2263_s12 }
 0x52f   :  { %1770 = vrot.lane.b32.xlu1 %v1724_v2, %s2262_s4 }
 0x531   :  { %1773 = vrot.lane.b32.xlu0 %v1721_v19, %s2265_s19 }
 0x533   :  { %1776 = vrot.lane.b32.xlu1 %v1725_v21, %s2263_s12 }
 0x56b   :  { %v1633_v11 = vpop.permute.xlu0 %1632 }
 0x56d   :  { %v1609_v22 = vpop.permute.xlu1 %1608 }
 0x56f   :  { %v1605_v23 = vpop.permute.xlu0 %1604 }
 0x570   :  { %v1656_v37 = vsel %vm644_vm3, %v2647_v51, %v1605_v23 }
 0x571   :  { %v1756_v24 = vpop.permute.xlu1 %1755  ;;  %v1657_v39 = vsel %vm2778_vm0, %v1656_v37, %v1609_v22 }
 0x573   :  { %v1617_v14 = vpop.permute.xlu0 %1616 }
 0x575   :  { %v1728_v25 = vpop.permute.xlu1 %1727 }
 0x576   :  { %v1779_v48 = vsel %vm644_vm3, %v2662_v4, %v1728_v25  ;;  %vm2782_vm3 = vcmask 982016  }
 0x577   :  { %v1636_v26 = vpop.permute.xlu0 %1635 }
 0x579   :  { %v1732_v27 = vpop.permute.xlu1 %1731 }
 0x57a   :  { %v1780_v50 = vsel %vm2780_vm2, %v1779_v48, %v1732_v27 }
 0x57b   :  { %v1639_v28 = vpop.permute.xlu0 %1638 }
 0x57d   :  { %v1740_v0 = vpop.permute.xlu1 %1739 }
 0x57f   :  { %v1645_v29 = vpop.permute.xlu0 %1644 }
 0x581   :  { %v1759_v30 = vpop.permute.xlu1 %1758 }
 0x583   :  { %v1613_v31 = vpop.permute.xlu0 %1612 }
 0x584   :  { %v1658_v40 = vsel %vm2779_vm1, %v1657_v39, %v1613_v31 }
 0x585   :  { %v1762_v32 = vpop.permute.xlu1 %1761  ;;  %v1659_v44 = vsel %vm788_vm6, %v1658_v40, %v1617_v14 }
 0x587   :  { %v1621_v33 = vpop.permute.xlu0 %1620 }
 0x588   :  { %v1660_v49 = vsel %vm790_vm7, %v1659_v44, %v1621_v33 }
 0x589   :  { %v1768_v34 = vpop.permute.xlu1 %1767 }
 0x58b   :  { %v1625_v35 = vpop.permute.xlu0 %1624 }
 0x58c   :  { %v1661_v45 = vsel %vm792_vm8, %v1660_v49, %v1625_v35 }
 0x58d   :  { %v1736_v36 = vpop.permute.xlu1 %1735 }
 0x58e   :  { %v1781_v52 = vsel %vm2781_vm4, %v1780_v50, %v1736_v36  ;;  %vm2783_vm4 = vmmov %vm2782_vm3 }
 0x58f   :  { %v1642_v38 = vpop.permute.xlu0 %1641  ;;  %v1782_v43 = vsel %vm788_vm6, %v1781_v52, %v1740_v0 }
 0x591   :  { %v1744_v41 = vpop.permute.xlu1 %1743 }
 0x592   :  { %v1783_v10 = vsel %vm790_vm7, %v1782_v43, %v1744_v41 }
 0x593   :  { %v1648_v42 = vpop.permute.xlu0 %1647 }
 0x595   :  { %v1748_v46 = vpop.permute.xlu1 %1747 }
 0x596   :  { %v1784_v62 = vsel %vm792_vm8, %v1783_v10, %v1748_v46 }
 0x597   :  { %v1629_v51 = vpop.permute.xlu0 %1628 }
 0x598   :  { %v1662_v54 = vsel %vm794_vm9, %v1661_v45, %v1629_v51 }
 0x599   :  { %v1663_v55 = vsel %vm796_vm10, %v1662_v54, %v1633_v11  ;;  %v1765_v56 = vpop.permute.xlu1 %1764 }
 0x59a   :  { %v1664_v57 = vsel %vm798_vm11, %v1663_v55, %v1636_v26 }
 0x59b   :  { %v1665_v4 = vsel %vm800_vm12, %v1664_v57, %v1639_v28  ;;  %v1651_v9 = vpop.permute.xlu0 %1650 }
 0x59c   :  { %v1666_v12 = vsel %vm802_vm13, %v1665_v4, %v1642_v38 }
 0x59d   :  { %v1667_v1 = vsel %vm804_vm14, %v1666_v12, %v1645_v29  ;;  %v1752_v13 = vpop.permute.xlu1 %1751 }
 0x59e   :  { %v1668_v61 = vsel %vm806_vm15, %v1667_v1, %v1648_v42  ;;  %v1785_v15 = vsel %vm794_vm9, %v1784_v62, %v1752_v13 }
 0x59f   :  { %v1669_v47 = vsel %vm808_vm5, %v1668_v61, %v1651_v9  ;;  %v1786_v63 = vsel %vm796_vm10, %v1785_v15, %v1756_v24  ;;  %v1654_v16 = vpop.permute.xlu0 %1653 }
 0x5a0   :  { %v1787_v17 = vsel %vm798_vm11, %v1786_v63, %v1759_v30  ;;  %v1670_v2 = vsel %vm2782_vm3, %v1669_v47, %v1654_v16 }
 0x5a1   :  { %v1788_v18 = vsel %vm800_vm12, %v1787_v17, %v1762_v32  ;;  %v1771_v19 = vpop.permute.xlu1 %1770  ;;  %v1797_v21 = vrot.slane %v1670_v2, %v2465_v53 }
 0x5a2   :  { %v1789_v20 = vsel %vm802_vm13, %v1788_v18, %v1765_v56 }
 0x5a3   :  { %v1774_v11 = vpop.permute.xlu0 %1773  ;;  %v1790_v22 = vsel %vm804_vm14, %v1789_v20, %v1768_v34  ;;  %v1798_v25 = vmul.f32 %v1797_v21, %v2588_v60  ;;  %v1799_v27 = vmul.f32 %v1797_v21, %v2592_v59  ;;  %v1800_v28 = vmul.f32 %v2586_v58, %v1797_v21 }
 0x5a4   :  { %v1791_v23 = vsel %vm806_vm15, %v1790_v22, %v1771_v19  ;;  %v1801_v0 = vmul.f32 %v2590_v3, %v1797_v21 }
 0x5a5   :  { %v1777_v14 = vpop.permute.xlu1 %1776  ;;  %v1792_v24 = vsel %vm808_vm5, %v1791_v23, %v1774_v11 }
 0x5a6   :  { %v1793_v26 = vsel %vm2783_vm4, %v1792_v24, %v1777_v14 }
 0x5a7   :  { %v1805_v29 = vrot.slane %v1793_v26, %v2465_v53 }
 0x5a9   :  { %v1806_v30 = vadd.f32 %v1805_v29, %v1798_v25  ;;  %v1807_v31 = vadd.f32 %v1805_v29, %v1799_v27  ;;  %v1808_v32 = vadd.f32 %v1805_v29, %v1800_v28  ;;  %v1809_v33 = vadd.f32 %v1805_v29, %v1801_v0 }
 0x5ab   :  { %v1810_v34 = vadd.f32 %v1806_v30, %v2367_v5  ;;  %v1811_v60 = vadd.f32 %v1807_v31, %v2369_v6  ;;  %v1812_v35 = vadd.f32 %v1808_v32, %v2373_v7  ;;  %v1813_v59 = vadd.f32 %v1809_v33, %v2375_v8 }
 0x5ad   :  { %v1814_v36 = vmax.f32 %v1810_v34, 0.0  ;;  %v1815_v58 = vmax.f32 %v1811_v60, 0.0  ;;  %v1816_v37 = vmax.f32 %v1812_v35, 0.0  ;;  %v1817_v3 = vmax.f32 %v1813_v59, 0.0 }
 0x5af   :  { %1818 = vst [vmem:[#allocation9] sm:$0xff] %v1814_v36  ;;  %1819 = vst [vmem:[#allocation9 + $0x8] sm:$0xff] %v1815_v58 }
 0x5b0   :  { %1820 = vst [vmem:[#allocation9 + $0x10] sm:$0xff] %v1816_v37  ;;  %1821 = vst [vmem:[#allocation9 + $0x18] sm:$0xff] %v1817_v3 }
 0x5b1   :  { %2237 = shalt.err (!%p2234_p0)
}
 0x5b2   :  { %s2238_s0 = scalar_lea.hbm %s2774_s7, 512 }
 0x5b3   :  { %p2239_p1 = scmp.ne.s32.totalorder %s2774_s7, %s2238_s0  ;;  %p2242_p2 = scmp.lt.u32.totalorder %s2238_s0, %s2774_s7 }
 0x5b5   :  { %p2244_p3 = pnand %p2242_p2, %p2239_p1 }
 0x5b7   :  { %2247 = shalt.err (!%p2244_p3)
}
 0x5b8   :  { %1833 = dma.vmem_to_hbm [thread:$0]  %s1828_s6, 512, %s2774_s7, [#allocation5], %s2258_s1, %s2258_s1, %s2259_s25  }
 0x5b9   :  { %2252 = dma.done.wait [#allocation5], 512  }
 0x5ba   :  { %2253 = vsyncadd [#allocation5], 4294966784 }
 0x5bb   :  { %1837 = vsyncpa [#allocation4], 1 }
 0x5bc   :  { %1838 = vsyncpa [#allocation7], 1 }
 0x5bd   :  { %1839 = vsyncpa [#allocation5], 1 }

</bundles_post_ra>
